<compile_context>
chip_gen: v5e
topology: v5e:2x2
jax: 0.10.0
libtpu: 0.0.40
codegen_flags: <defaults>
</compile_context>

<pallas_src>
import functools

import jax
import jax.numpy as jnp
from jax.experimental import pallas as pl
from jax.experimental.pallas import tpu as pltpu

LATENT_DIM = 20
HIDDEN_DIM = 400
OUTPUT_DIM = 28 * 28            # 784
NUM_CLASSES = 10                # mu_mean / log_var_mean are per-class latent means

LATENT_PAD = 128                # 20  -> 128  (lane multiple)
HIDDEN_PAD = 512                # 400 -> 512  (lane multiple)
OUTPUT_PAD = 896                # 784 -> 896  (lane multiple)
ACT_WIDTH = 3 * LATENT_PAD      # [mu | log_var | eps] packed
STATS_WIDTH = 2 * LATENT_PAD    # [mu_mean | log_var_mean] per class
CLASS_PAD = 16                  # 10 -> 16 class rows (sublane multiple)

MAX_TILE_B = 256                # rows per grid step for large batches


def _round_up(x, m):
    return ((x + m - 1) // m) * m


# --------------------------------------------------------------------------
# Batched decoder kernel: one packed activation stream, resident bf16 weights.
# --------------------------------------------------------------------------
def _decoder_kernel(acts_ref, w1_ref, b1_ref, w2_ref, b2_ref, out_ref):
    mu = acts_ref[:, 0:LATENT_PAD]
    lv = acts_ref[:, LATENT_PAD:2 * LATENT_PAD]
    eps = acts_ref[:, 2 * LATENT_PAD:3 * LATENT_PAD]

    # reparametrize: z = mu + eps * exp(0.5 * log_var)
    z = mu + eps * jnp.exp(0.5 * lv)

    # fc: Linear(latent -> hidden) + ReLU  (bf16 MXU, f32 accumulate)
    h = jnp.dot(z.astype(jnp.bfloat16), w1_ref[...],
                preferred_element_type=jnp.float32) + b1_ref[...]
    h = jnp.maximum(h, 0.0)

    # fc_out: Linear(hidden -> output) + Sigmoid
    y = jnp.dot(h.astype(jnp.bfloat16), w2_ref[...],
                preferred_element_type=jnp.float32) + b2_ref[...]
    out_ref[...] = jax.nn.sigmoid(y).astype(out_ref.dtype)


@functools.partial(jax.jit, static_argnames=("tile_b", "out_dtype"))
def _decode_padded(acts, w1, b1, w2, b2, *, tile_b, out_dtype):
    """acts: (B_pad, ACT_WIDTH) f32 with B_pad % tile_b == 0.

    Returns (B_pad, OUTPUT_PAD) in `out_dtype`."""
    b_pad = acts.shape[0]
    nb = b_pad // tile_b
    # NOTE: weight/bias BlockSpecs use a constant index_map, so they are DMA'd
    # once and stay VMEM-resident across all batch steps.  (pl.Buffered(1) on
    # them would save ~1 MiB of second buffer; left at the default for safety.)
    return pl.pallas_call(
        _decoder_kernel,
        out_shape=jax.ShapeDtypeStruct((b_pad, OUTPUT_PAD), out_dtype),
        grid=(nb,),
        in_specs=[
            pl.BlockSpec((tile_b, ACT_WIDTH), lambda b: (b, 0)),       # [mu|lv|eps]
            pl.BlockSpec((LATENT_PAD, HIDDEN_PAD), lambda b: (0, 0)),  # W1 (resident)
            pl.BlockSpec((1, HIDDEN_PAD), lambda b: (0, 0)),           # b1 (resident)
            pl.BlockSpec((HIDDEN_PAD, OUTPUT_PAD), lambda b: (0, 0)),  # W2 (resident)
            pl.BlockSpec((1, OUTPUT_PAD), lambda b: (0, 0)),           # b2 (resident)
        ],
        out_specs=pl.BlockSpec((tile_b, OUTPUT_PAD), lambda b: (b, 0)),
        compiler_params=pltpu.CompilerParams(
            dimension_semantics=("parallel",),   # v7x: split batch over 2 TCs
            vmem_limit_bytes=32 << 20,           # tiles use <5 MiB even at 256 rows
        ),
    )(acts, w1, b1, w2, b2)


def decode_batch(params, mu, log_var, eps, *, out_dtype=jnp.float32,
                 keep_padded=False):
    """mu / log_var / eps: (B, LATENT_PAD) f32.

    Returns decoded images (B, OUTPUT_DIM), or the raw (B_pad, OUTPUT_PAD)
    kernel buffer when keep_padded=True (skips an extra HBM copy for large B;
    padded columns hold sigmoid(0)=0.5 and padded rows are garbage)."""
    b = mu.shape[0]
    if b <= MAX_TILE_B:
        b_pad = _round_up(max(b, 1), 8)
        tile_b = b_pad                       # single grid step (latency regime)
    else:
        b_pad = _round_up(b, MAX_TILE_B)
        tile_b = MAX_TILE_B                  # >=2 steps -> both v7x TCs busy

    acts = jnp.concatenate([mu, log_var, eps], axis=1)       # (B, 384)
    if b_pad != b:
        acts = jnp.pad(acts, ((0, b_pad - b), (0, 0)))

    out = _decode_padded(acts, params["w1"], params["b1"], params["w2"],
                         params["b2"], tile_b=tile_b, out_dtype=out_dtype)
    if keep_padded:
        return out
    return out[:b, :OUTPUT_DIM]


# --------------------------------------------------------------------------
# Fused single-sample kernel (Fashion.forward(idx)): the per-class gather is
# done inside the kernel from a VMEM-resident stats table using a
# scalar-prefetched idx.
# --------------------------------------------------------------------------
def _fused_single_kernel(idx_ref, stats_ref, eps_ref,
                         w1_ref, b1_ref, w2_ref, b2_ref, out_ref):
    row = stats_ref[pl.ds(idx_ref[0], 1), :]          # (1, 256) = [mu | log_var]
    mu = row[:, 0:LATENT_PAD]
    lv = row[:, LATENT_PAD:STATS_WIDTH]

    z = mu + eps_ref[...] * jnp.exp(0.5 * lv)
    h = jnp.dot(z.astype(jnp.bfloat16), w1_ref[...],
                preferred_element_type=jnp.float32) + b1_ref[...]
    h = jnp.maximum(h, 0.0)
    y = jnp.dot(h.astype(jnp.bfloat16), w2_ref[...],
                preferred_element_type=jnp.float32) + b2_ref[...]
    out_ref[...] = jax.nn.sigmoid(y).astype(out_ref.dtype)


@jax.jit
def _decode_single(idx, stats, eps, w1, b1, w2, b2):
    """idx: (1,) int32; stats: (CLASS_PAD, STATS_WIDTH); eps: (1, LATENT_PAD)."""
    grid_spec = pltpu.PrefetchScalarGridSpec(
        num_scalar_prefetch=1,
        grid=(1,),
        in_specs=[
            pl.BlockSpec((CLASS_PAD, STATS_WIDTH), lambda i, idx_ref: (0, 0)),
            pl.BlockSpec((1, LATENT_PAD), lambda i, idx_ref: (0, 0)),
            pl.BlockSpec((LATENT_PAD, HIDDEN_PAD), lambda i, idx_ref: (0, 0)),
            pl.BlockSpec((1, HIDDEN_PAD), lambda i, idx_ref: (0, 0)),
            pl.BlockSpec((HIDDEN_PAD, OUTPUT_PAD), lambda i, idx_ref: (0, 0)),
            pl.BlockSpec((1, OUTPUT_PAD), lambda i, idx_ref: (0, 0)),
        ],
        out_specs=pl.BlockSpec((1, OUTPUT_PAD), lambda i, idx_ref: (0, 0)),
    )
    return pl.pallas_call(
        _fused_single_kernel,
        out_shape=jax.ShapeDtypeStruct((1, OUTPUT_PAD), jnp.float32),
        grid_spec=grid_spec,
        compiler_params=pltpu.CompilerParams(
            dimension_semantics=("arbitrary",),
            vmem_limit_bytes=32 << 20,
        ),
    )(idx, stats, eps, w1, b1, w2, b2)


def fashion_forward(params, idx: int, eps_key):
    """Equivalent of Fashion.forward(idx, visualize=False): returns (1, 28, 28)."""
    idx_arr = jnp.asarray([idx], dtype=jnp.int32)
    # eps drawn over the padded latent width: values in columns 20..127 multiply
    # zero rows of W1 and never affect the result.
    eps = jax.random.normal(eps_key, (1, LATENT_PAD), jnp.float32)
    # TODO(synk): eps could also be generated in-kernel (pltpu prng) to drop the
    # last activation input stream; kept host-side for portability.
    flat = _decode_single(idx_arr, params["stats"], eps,
                          params["w1"], params["b1"], params["w2"], params["b2"])
    return flat[:, :OUTPUT_DIM].reshape(1, 28, 28)
    # TODO(synk): torchvision.make_grid / matplotlib visualization has no Pallas
    # equivalent; only the numeric output path is implemented.


# --------------------------------------------------------------------------
# Parameters (synthetic stand-ins for vae_decoder.pt / mu_mean.pt / log_var_mean.pt).
# --------------------------------------------------------------------------
def init_params(key):
    """PyTorch-style uniform(-1/sqrt(fan_in), 1/sqrt(fan_in)) init, padded to
    lane-aligned shapes; weights cast to bf16 once, host-side."""
    k1, k2, k3, k4, k5, k6 = jax.random.split(key, 6)
    lim1 = 1.0 / jnp.sqrt(float(LATENT_DIM))
    lim2 = 1.0 / jnp.sqrt(float(HIDDEN_DIM))
    w1 = jax.random.uniform(k1, (LATENT_DIM, HIDDEN_DIM), jnp.float32, -lim1, lim1)
    b1 = jax.random.uniform(k2, (HIDDEN_DIM,), jnp.float32, -lim1, lim1)
    w2 = jax.random.uniform(k3, (HIDDEN_DIM, OUTPUT_DIM), jnp.float32, -lim2, lim2)
    b2 = jax.random.uniform(k4, (OUTPUT_DIM,), jnp.float32, -lim2, lim2)
    mu_mean = jax.random.normal(k5, (NUM_CLASSES, LATENT_DIM), jnp.float32)
    log_var_mean = 0.1 * jax.random.normal(k6, (NUM_CLASSES, LATENT_DIM), jnp.float32)

    w1p = jnp.zeros((LATENT_PAD, HIDDEN_PAD), jnp.bfloat16)
    w1p = w1p.at[:LATENT_DIM, :HIDDEN_DIM].set(w1.astype(jnp.bfloat16))
    b1p = jnp.zeros((1, HIDDEN_PAD), jnp.float32).at[0, :HIDDEN_DIM].set(b1)
    w2p = jnp.zeros((HIDDEN_PAD, OUTPUT_PAD), jnp.bfloat16)
    w2p = w2p.at[:HIDDEN_DIM, :OUTPUT_DIM].set(w2.astype(jnp.bfloat16))
    b2p = jnp.zeros((1, OUTPUT_PAD), jnp.float32).at[0, :OUTPUT_DIM].set(b2)

    mu_mean_p = jnp.zeros((NUM_CLASSES, LATENT_PAD), jnp.float32)
    mu_mean_p = mu_mean_p.at[:, :LATENT_DIM].set(mu_mean)
    lv_mean_p = jnp.zeros((NUM_CLASSES, LATENT_PAD), jnp.float32)
    lv_mean_p = lv_mean_p.at[:, :LATENT_DIM].set(log_var_mean)

    # class-stats table for the fused single-sample kernel: [mu_mean | log_var_mean]
    stats = jnp.zeros((CLASS_PAD, STATS_WIDTH), jnp.float32)
    stats = stats.at[:NUM_CLASSES, :LATENT_PAD].set(mu_mean_p)
    stats = stats.at[:NUM_CLASSES, LATENT_PAD:].set(lv_mean_p)

    return dict(w1=w1p, b1=b1p, w2=w2p, b2=b2p,
                mu_mean=mu_mean_p, log_var_mean=lv_mean_p, stats=stats)


def _reference_decode(params, mu, lv, eps):
    """Pure-JAX reference with the same bf16-weight / f32-accumulate numerics."""
    z = (mu + eps * jnp.exp(0.5 * lv)).astype(jnp.bfloat16)
    h = jnp.maximum(jnp.dot(z, params["w1"], preferred_element_type=jnp.float32)
                    + params["b1"], 0.0)
    y = jnp.dot(h.astype(jnp.bfloat16), params["w2"],
                preferred_element_type=jnp.float32) + params["b2"]
    return jax.nn.sigmoid(y)[:, :OUTPUT_DIM]


if __name__ == "__main__":
    key = jax.random.PRNGKey(0)
    pkey, ekey, bkey = jax.random.split(key, 3)
    params = init_params(pkey)

    # --- single-sample forward (matches Fashion.forward(idx, visualize=False)) ---
    idx = 3
    out = fashion_forward(params, idx, ekey)
    out = jax.block_until_ready(out)
    assert out.shape == (1, 28, 28)
    assert bool(jnp.all(jnp.isfinite(out)))
    assert bool(jnp.all((out >= 0.0) & (out <= 1.0)))      # sigmoid output range

    # reference check for the fused-gather path (same eps, same class row)
    eps_s = jax.random.normal(ekey, (1, LATENT_PAD), jnp.float32)
    ref_s = _reference_decode(params, params["mu_mean"][idx:idx + 1],
                              params["log_var_mean"][idx:idx + 1], eps_s)
    assert bool(jnp.max(jnp.abs(out.reshape(1, OUTPUT_DIM) - ref_s)) < 2e-2)

    # --- batched decode: all 10 classes in one pallas_call (weights stay
    #     VMEM-resident; 10 rows -> 16-row tile -> single grid step) ---
    idxs = jnp.arange(NUM_CLASSES)
    mu_b = params["mu_mean"][idxs]
    lv_b = params["log_var_mean"][idxs]
    eps_b = jax.random.normal(bkey, (NUM_CLASSES, LATENT_PAD), jnp.float32)
    imgs_flat = decode_batch(params, mu_b, lv_b, eps_b)      # (10, 784) f32
    imgs_flat = jax.block_until_ready(imgs_flat)
    imgs = imgs_flat.reshape(NUM_CLASSES, 28, 28)
    assert imgs.shape == (NUM_CLASSES, 28, 28)
    assert bool(jnp.all(jnp.isfinite(imgs)))
    assert bool(jnp.all((imgs >= 0.0) & (imgs <= 1.0)))

    # reference check for the batched path
    ref_b = _reference_decode(params, mu_b, lv_b, eps_b)
    assert bool(jnp.max(jnp.abs(imgs_flat - ref_b)) < 2e-2)

    print("KERNEL_OK")
</pallas_src>

<mosaic_0001>
module attributes {stable_mosaic.version = 11 : i64} {
  func.func @_fused_single_kernel(%arg0: i32, %arg1: memref<1xi32, #tpu.memory_space<smem>>, %arg2: memref<16x256xf32, #tpu.memory_space<vmem>>, %arg3: memref<1x128xf32, #tpu.memory_space<vmem>>, %arg4: memref<128x512xbf16, #tpu.memory_space<vmem>>, %arg5: memref<1x512xf32, #tpu.memory_space<vmem>>, %arg6: memref<512x896xbf16, #tpu.memory_space<vmem>>, %arg7: memref<1x896xf32, #tpu.memory_space<vmem>>, %arg8: memref<1x896xf32, #tpu.memory_space<vmem>>) attributes {dimension_semantics = [#tpu.dimension_semantics<arbitrary>], iteration_bounds = array<i64: 1>, scalar_prefetch = 1 : i64, scratch_operands = 0 : i64, tpu.core_type = #tpu.core_type<tc>, window_params = [{pipeline_mode = #tpu.pipeline_mode<synchronous>, transform_indices = @transform_0, window_bounds = array<i64: 16, 256>}, {pipeline_mode = #tpu.pipeline_mode<synchronous>, transform_indices = @transform_1, window_bounds = array<i64: 1, 128>}, {pipeline_mode = #tpu.pipeline_mode<synchronous>, transform_indices = @transform_2, window_bounds = array<i64: 128, 512>}, {pipeline_mode = #tpu.pipeline_mode<synchronous>, transform_indices = @transform_3, window_bounds = array<i64: 1, 512>}, {pipeline_mode = #tpu.pipeline_mode<synchronous>, transform_indices = @transform_4, window_bounds = array<i64: 512, 896>}, {pipeline_mode = #tpu.pipeline_mode<synchronous>, transform_indices = @transform_5, window_bounds = array<i64: 1, 896>}, {pipeline_mode = #tpu.pipeline_mode<synchronous>, transform_indices = @transform_6, window_bounds = array<i64: 1, 896>}]} {
    %c0 = arith.constant 0 : index
    %0 = memref.load %arg1[%c0] : memref<1xi32, #tpu.memory_space<smem>>
    %1 = arith.index_cast %0 : i32 to index
    %c0_0 = arith.constant 0 : index
    %2 = vector.load %arg2[%1, %c0_0] : memref<16x256xf32, #tpu.memory_space<vmem>>, vector<1x256xf32>
    %3 = vector.extract_strided_slice %2 {offsets = [0, 0], sizes = [1, 128], strides = [1, 1]} : vector<1x256xf32> to vector<1x128xf32>
    %4 = vector.extract_strided_slice %2 {offsets = [0, 128], sizes = [1, 128], strides = [1, 1]} : vector<1x256xf32> to vector<1x128xf32>
    %c0_1 = arith.constant 0 : index
    %c0_2 = arith.constant 0 : index
    %5 = vector.load %arg3[%c0_1, %c0_2] : memref<1x128xf32, #tpu.memory_space<vmem>>, vector<1x128xf32>
    %cst = arith.constant 5.000000e-01 : f32
    %6 = vector.broadcast %cst : f32 to vector<1x128xf32>
    %7 = arith.mulf %6, %4 : vector<1x128xf32>
    %8 = math.exp %7 : vector<1x128xf32>
    %9 = arith.mulf %5, %8 : vector<1x128xf32>
    %10 = arith.addf %3, %9 : vector<1x128xf32>
    %11 = arith.truncf %10 : vector<1x128xf32> to vector<1x128xbf16>
    %c0_3 = arith.constant 0 : index
    %c0_4 = arith.constant 0 : index
    %12 = vector.load %arg4[%c0_3, %c0_4] : memref<128x512xbf16, #tpu.memory_space<vmem>>, vector<128x512xbf16>
    %cst_5 = arith.constant dense<0.000000e+00> : vector<1x512xf32>
    %13 = tpu.matmul %11, %12, %cst_5 {dimension_numbers = #tpu.dot_dimension_numbers<[1], [0], [0], [1], [0, 0, 1, 1], [], []>} : vector<1x128xbf16>, vector<128x512xbf16>, vector<1x512xf32> -> vector<1x512xf32>
    %c0_6 = arith.constant 0 : index
    %c0_7 = arith.constant 0 : index
    %14 = vector.load %arg5[%c0_6, %c0_7] : memref<1x512xf32, #tpu.memory_space<vmem>>, vector<1x512xf32>
    %15 = arith.addf %13, %14 : vector<1x512xf32>
    %cst_8 = arith.constant 0.000000e+00 : f32
    %16 = vector.broadcast %cst_8 : f32 to vector<1x512xf32>
    %17 = arith.maximumf %15, %16 : vector<1x512xf32>
    %18 = arith.truncf %17 : vector<1x512xf32> to vector<1x512xbf16>
    %c0_9 = arith.constant 0 : index
    %c0_10 = arith.constant 0 : index
    %19 = vector.load %arg6[%c0_9, %c0_10] : memref<512x896xbf16, #tpu.memory_space<vmem>>, vector<512x896xbf16>
    %cst_11 = arith.constant dense<0.000000e+00> : vector<1x896xf32>
    %20 = tpu.matmul %18, %19, %cst_11 {dimension_numbers = #tpu.dot_dimension_numbers<[1], [0], [0], [1], [0, 0, 1, 1], [], []>} : vector<1x512xbf16>, vector<512x896xbf16>, vector<1x896xf32> -> vector<1x896xf32>
    %c0_12 = arith.constant 0 : index
    %c0_13 = arith.constant 0 : index
    %21 = vector.load %arg7[%c0_12, %c0_13] : memref<1x896xf32, #tpu.memory_space<vmem>>, vector<1x896xf32>
    %22 = arith.addf %20, %21 : vector<1x896xf32>
    %23 = arith.negf %22 : vector<1x896xf32>
    %24 = math.exp %23 : vector<1x896xf32>
    %cst_14 = arith.constant 1.000000e+00 : f32
    %25 = vector.broadcast %cst_14 : f32 to vector<1x896xf32>
    %26 = arith.addf %25, %24 : vector<1x896xf32>
    %27 = arith.divf %25, %26 : vector<1x896xf32>
    %c0_15 = arith.constant 0 : index
    %c0_16 = arith.constant 0 : index
    %28 = vector.load %arg8[%c0_15, %c0_16] : memref<1x896xf32, #tpu.memory_space<vmem>>, vector<1x896xf32>
    tpu.vector_store %arg8[%c0_15, %c0_16], %27 {strides = array<i32>} : memref<1x896xf32, #tpu.memory_space<vmem>>, vector<1x896xf32>,
    return
  }
  func.func @transform_0(%arg0: i32, %arg1: memref<1xi32, #tpu.memory_space<smem>>) -> (i32, i32) {
    %c0_i32 = arith.constant 0 : i32
    %c0_i32_0 = arith.constant 0 : i32
    %c0_i32_1 = arith.constant 0 : i32
    return %c0_i32, %c0_i32_0 : i32, i32
  }
  func.func @transform_1(%arg0: i32, %arg1: memref<1xi32, #tpu.memory_space<smem>>) -> (i32, i32) {
    %c0_i32 = arith.constant 0 : i32
    %c0_i32_0 = arith.constant 0 : i32
    %c0_i32_1 = arith.constant 0 : i32
    return %c0_i32, %c0_i32_0 : i32, i32
  }
  func.func @transform_2(%arg0: i32, %arg1: memref<1xi32, #tpu.memory_space<smem>>) -> (i32, i32) {
    %c0_i32 = arith.constant 0 : i32
    %c0_i32_0 = arith.constant 0 : i32
    %c0_i32_1 = arith.constant 0 : i32
    return %c0_i32, %c0_i32_0 : i32, i32
  }
  func.func @transform_3(%arg0: i32, %arg1: memref<1xi32, #tpu.memory_space<smem>>) -> (i32, i32) {
    %c0_i32 = arith.constant 0 : i32
    %c0_i32_0 = arith.constant 0 : i32
    %c0_i32_1 = arith.constant 0 : i32
    return %c0_i32, %c0_i32_0 : i32, i32
  }
  func.func @transform_4(%arg0: i32, %arg1: memref<1xi32, #tpu.memory_space<smem>>) -> (i32, i32) {
    %c0_i32 = arith.constant 0 : i32
    %c0_i32_0 = arith.constant 0 : i32
    %c0_i32_1 = arith.constant 0 : i32
    return %c0_i32, %c0_i32_0 : i32, i32
  }
  func.func @transform_5(%arg0: i32, %arg1: memref<1xi32, #tpu.memory_space<smem>>) -> (i32, i32) {
    %c0_i32 = arith.constant 0 : i32
    %c0_i32_0 = arith.constant 0 : i32
    %c0_i32_1 = arith.constant 0 : i32
    return %c0_i32, %c0_i32_0 : i32, i32
  }
  func.func @transform_6(%arg0: i32, %arg1: memref<1xi32, #tpu.memory_space<smem>>) -> (i32, i32) {
    %c0_i32 = arith.constant 0 : i32
    %c0_i32_0 = arith.constant 0 : i32
    %c0_i32_1 = arith.constant 0 : i32
    return %c0_i32, %c0_i32_0 : i32, i32
  }
}

</mosaic_0001>

<bundles_post_ra>
// kernel: _decode_single.1
= control target key start
LH: loop header
LB: loop body
LE: loop exit
PB: predicated region body
PF: predicated region fallthrough
CT: control target
= control target key end

     0   :  { %13 = vsyncpa [#allocation5], 0  ;;  %s3980_s0 = inlined_call_operand.<no memory space> [shape: s32[1], index: 0, kind: input, shape index: {}]   ;;  %s3981_s1 = inlined_call_operand.hbm [shape: f32[16,256], index: 1, kind: input, shape index: {}]   ;;  %s3982_s2 = inlined_call_operand.hbm [shape: f32[1,128], index: 2, kind: input, shape index: {}]   ;;  %s3983_s3 = inlined_call_operand.hbm [shape: bf16[128,512], index: 3, kind: input, shape index: {}]   ;;  %s3984_s4 = inlined_call_operand.vmem [shape: f32[1,512], index: 4, kind: input, shape index: {}]   ;;  %s3985_s5 = inlined_call_operand.hbm [shape: bf16[512,896], index: 5, kind: input, shape index: {}]   ;;  %s3986_s6 = inlined_call_operand.hbm [shape: f32[1,896], index: 6, kind: input, shape index: {}]   ;;  %s3987_s7 = inlined_call_operand.hbm [shape: f32[1,896], index: 7, kind: output, shape index: {}]  }
   0x1   :  { %14 = vsyncpa [#allocation8], 0 }
   0x2   :  { %15 = vsyncpa [#allocation11], 0  ;;  %s35_s26 = sshll.u32 %s3982_s2, 4  ;;  %s36_s26 = int_to_ptr.hbm [resolvable:$true] %s35_s26 }
   0x3   :  { %16 = vsyncpa [#allocation6], 0  ;;  %s3838_s27 = smov [#allocation7]   ;;  %s60_s8 = sshll.u32 %s3985_s5, 4  ;;  %s61_s8 = int_to_ptr.hbm [resolvable:$true] %s60_s8 }
   0x4   :  { %s37_s28 = sshll.u32 %s3838_s27, 4  ;;  %s3839_s9 = smov [#allocation10]   ;;  %s38_s28 = int_to_ptr.vmem [resolvable:$true] %s37_s28 }
   0x5   :  { %40 = dma.hbm_to_vmem [thread:$0]  %s36_s26, 16, %s38_s28, [#allocation8]  }
   0x6   :  { %s62_s10 = sshll.u32 %s3839_s9, 4  ;;  %s3840_s11 = smov 448   ;;  %s63_s10 = int_to_ptr.vmem [resolvable:$true] %s62_s10 }
   0x7   :  { %s3841_s12 = smov 28   ;;  %s21_s2 = sshll.u32 %s3981_s1, 4  ;;  %s22_s2 = int_to_ptr.hbm [resolvable:$true] %s21_s2 }
   0x8   :  { %68 = dma.hbm_to_vmem [thread:$0]  %s61_s8, 28672, %s63_s10, [#allocation11], %s3840_s11, %s3840_s11, %s3841_s12  }
   0x9   :  { %s3842_s15 = smov [#allocation4]   ;;  %s45_s5 = sshll.u32 %s3983_s3, 4  ;;  %s46_s5 = int_to_ptr.hbm [resolvable:$true] %s45_s5 }
   0xa   :  { %s23_s16 = sshll.u32 %s3842_s15, 4  ;;  %s3843_s19 = smov 256   ;;  %s24_s16 = int_to_ptr.vmem [resolvable:$true] %s23_s16 }
   0xb   :  { %s3844_s20 = smov 16   ;;  %s3845_s21 = smov [#allocation9]  }
   0xc   :  { %29 = dma.hbm_to_vmem [thread:$0]  %s22_s2, 512, %s24_s16, [#allocation5], %s3843_s19, %s3843_s19, %s3844_s20  }
   0xd   :  { %s47_s22 = sshll.u32 %s3845_s21, 4  ;;  %s74_s25 = sshll.u32 %s3986_s6, 4  ;;  %s48_s22 = int_to_ptr.vmem [resolvable:$true] %s47_s22  ;;  %s75_s25 = int_to_ptr.hbm [resolvable:$true] %s74_s25 }
   0xe   :  { %53 = dma.hbm_to_vmem [thread:$0]  %s46_s5, 4096, %s48_s22, [#allocation8], %s3843_s19, %s3843_s19, %s3844_s20  }
   0xf   :  { %s3846_s1 = smov [#allocation12]  }
  0x10   :  { %s76_s26 = sshll.u32 %s3846_s1, 4  ;;  %s77_s26 = int_to_ptr.vmem [resolvable:$true] %s76_s26 }
  0x11   :  { %79 = dma.hbm_to_vmem [thread:$0]  %s75_s25, 112, %s77_s26, [#allocation11]  }
  0x12   :  { %3830 = dma.done.wait [#allocation5], 512  }
  0x13   :  { %3831 = vsyncadd [#allocation5], 4294966784 }
  0x14   :  { %3832 = dma.done.wait [#allocation8], 4112  }
  0x15   :  { %3833 = vsyncadd [#allocation8], 4294963184 }
  0x16   :  { %3834 = dma.done.wait [#allocation11], 28784  }
  0x17   :  { %3835 = vsyncadd [#allocation11], 4294938512  ;;  %s101_s28 = sshra.s32 %s3980_s0, 3  ;;  %v2472_v0 = vld [vmem:[#allocation9 + $0xe0] sm:$0xf]  ;;  %s104_s30 = sand.u32 7, %s3980_s0 }
  0x18   :  { %v3420_v1 = vld [vmem:[#allocation9 + $0xec] sm:$0xf0]  ;;  %v3418_v2 = vld [vmem:[#allocation9 + $0xe4] sm:$0xf]  ;;  %v2474_v4 = vld [vmem:[#allocation9 + $0xf0] sm:$0xf0] }
  0x19   :  { %v2473_v3 = vor.u32 %v3420_v1, %v2472_v0  ;;  %v2480_v5 = vld [vmem:[#allocation9 + $0xe8] sm:$0xf]  ;;  %v3421_v6 = vld [vmem:[#allocation9 + $0xf4] sm:$0xf0]  ;;  %v2477_v7 = vor.u32 %v3418_v2, %v2474_v4  ;;  %v3419_v9 = vld [vmem:[#allocation9 + $0xec] sm:$0xf] }
  0x1a   :  { %v2481_v8 = vor.u32 %v3421_v6, %v2480_v5  ;;  %v2482_v10 = vld [vmem:[#allocation9 + $0xf8] sm:$0xf0]  ;;  %v2456_v11 = vld [vmem:[#allocation9 + $0xc0] sm:$0xf]  ;;  %v3416_v13 = vld [vmem:[#allocation9 + $0xcc] sm:$0xf0] }
  0x1b   :  { %322 = vmatpush.bf16.msra.mxu0 %v2473_v3  ;;  %v2485_v12 = vor.u32 %v3419_v9, %v2482_v10  ;;  %v3414_v14 = vld [vmem:[#allocation9 + $0xc4] sm:$0xf]  ;;  %v2458_v15 = vld [vmem:[#allocation9 + $0xd0] sm:$0xf0]  ;;  %335 = vmatpush.bf16.msra.mxu1 %v2477_v7  ;;  %v2457_v16 = vor.u32 %v3416_v13, %v2456_v11  ;;  %v2464_v18 = vld [vmem:[#allocation9 + $0xc8] sm:$0xf] }
  0x1c   :  { %348 = vmatpush.bf16.msra.mxu2 %v2481_v8  ;;  %v2461_v17 = vor.u32 %v3414_v14, %v2458_v15  ;;  %v3417_v19 = vld [vmem:[#allocation9 + $0xd4] sm:$0xf0]  ;;  %v3415_v20 = vld [vmem:[#allocation9 + $0xcc] sm:$0xf]  ;;  %v2466_v22 = vld [vmem:[#allocation9 + $0xd8] sm:$0xf0] }
  0x1d   :  { %361 = vmatpush.bf16.msra.mxu3 %v2485_v12  ;;  %v2465_v21 = vor.u32 %v3417_v19, %v2464_v18  ;;  %v2440_v23 = vld [vmem:[#allocation9 + $0xa0] sm:$0xf]  ;;  %v3412_v24 = vld [vmem:[#allocation9 + $0xac] sm:$0xf0]  ;;  %v2469_v25 = vor.u32 %v3415_v20, %v2466_v22  ;;  %v3410_v26 = vld [vmem:[#allocation9 + $0xa4] sm:$0xf] }
  0x1e   :  { %v2442_v27 = vld [vmem:[#allocation9 + $0xb0] sm:$0xf0]  ;;  %v2448_v28 = vld [vmem:[#allocation9 + $0xa8] sm:$0xf]  ;;  %v2441_v29 = vor.u32 %v3412_v24, %v2440_v23  ;;  %v3413_v30 = vld [vmem:[#allocation9 + $0xb4] sm:$0xf0] }
  0x1f   :  { %323 = vmatpush.bf16.msra.mxu0 %v2457_v16  ;;  %v3411_v31 = vld [vmem:[#allocation9 + $0xac] sm:$0xf]  ;;  %v2450_v32 = vld [vmem:[#allocation9 + $0xb8] sm:$0xf0]  ;;  %336 = vmatpush.bf16.msra.mxu1 %v2461_v17  ;;  %v2445_v33 = vor.u32 %v3410_v26, %v2442_v27  ;;  %v2449_v34 = vor.u32 %v3413_v30, %v2448_v28  ;;  %v2424_v35 = vld [vmem:[#allocation9 + $0x80] sm:$0xf] }
  0x20   :  { %349 = vmatpush.bf16.msra.mxu2 %v2465_v21  ;;  %v3408_v36 = vld [vmem:[#allocation9 + $0x8c] sm:$0xf0]  ;;  %v3406_v37 = vld [vmem:[#allocation9 + $0x84] sm:$0xf]  ;;  %v2453_v38 = vor.u32 %v3411_v31, %v2450_v32  ;;  %v2426_v39 = vld [vmem:[#allocation9 + $0x90] sm:$0xf0] }
  0x21   :  { %362 = vmatpush.bf16.msra.mxu3 %v2469_v25  ;;  %v2432_v40 = vld [vmem:[#allocation9 + $0x88] sm:$0xf]  ;;  %v3409_v41 = vld [vmem:[#allocation9 + $0x94] sm:$0xf0]  ;;  %v3407_v42 = vld [vmem:[#allocation9 + $0x8c] sm:$0xf]  ;;  %v2425_v44 = vor.u32 %v3408_v36, %v2424_v35  ;;  %v2429_v45 = vor.u32 %v3406_v37, %v2426_v39 }
  0x22   :  { %v2434_v43 = vld [vmem:[#allocation9 + $0x98] sm:$0xf0]  ;;  %s3389_s10 = sshll.u32 %s101_s28, 4  ;;  %v2433_v46 = vor.u32 %v3409_v41, %v2432_v40  ;;  %v2408_v47 = vld [vmem:[#allocation9 + $0x60] sm:$0xf]  ;;  %vm2316_vm7 = vcmask 1040384  }
  0x23   :  { %324 = vmatpush.bf16.msra.mxu0 %v2441_v29  ;;  %337 = vmatpush.bf16.msra.mxu1 %v2445_v33  ;;  %v3404_v48 = vld [vmem:[#allocation9 + $0x6c] sm:$0xf0]  ;;  %v3402_v49 = vld [vmem:[#allocation9 + $0x64] sm:$0xf]  ;;  %v2437_v50 = vor.u32 %v3407_v42, %v2434_v43  ;;  %v2410_v51 = vld [vmem:[#allocation9 + $0x70] sm:$0xf0]  ;;  %s3913_s11 = sadd.s32 %s3389_s10, %s104_s30 }
  0x24   :  { %350 = vmatpush.bf16.msra.mxu2 %v2449_v34  ;;  %v2416_v52 = vld [vmem:[#allocation9 + $0x68] sm:$0xf]  ;;  %v3405_v53 = vld [vmem:[#allocation9 + $0x74] sm:$0xf0]  ;;  %v3403_v54 = vld [vmem:[#allocation9 + $0x6c] sm:$0xf]  ;;  %v2409_v56 = vor.u32 %v3404_v48, %v2408_v47  ;;  %v2413_v57 = vor.u32 %v3402_v49, %v2410_v51 }
  0x25   :  { %363 = vmatpush.bf16.msra.mxu3 %v2453_v38  ;;  %v2418_v55 = vld [vmem:[#allocation9 + $0x78] sm:$0xf0]  ;;  %v2417_v58 = vor.u32 %v3405_v53, %v2416_v52  ;;  %v2392_v59 = vld [vmem:[#allocation9 + $0x40] sm:$0xf]  ;;  %v3400_v60 = vld [vmem:[#allocation9 + $0x4c] sm:$0xf0] }
  0x26   :  { %v3398_v61 = vld [vmem:[#allocation9 + $0x44] sm:$0xf]  ;;  %v2421_v62 = vor.u32 %v3403_v54, %v2418_v55  ;;  %v2394_v63 = vld [vmem:[#allocation9 + $0x50] sm:$0xf0]  ;;  %v2400_v0 = vld [vmem:[#allocation9 + $0x48] sm:$0xf]  ;;  %v2393_v4 = vor.u32 %v3400_v60, %v2392_v59 }
  0x27   :  { %325 = vmatpush.bf16.msra.mxu0 %v2425_v44  ;;  %338 = vmatpush.bf16.msra.mxu1 %v2429_v45  ;;  %v3401_v1 = vld [vmem:[#allocation9 + $0x54] sm:$0xf0]  ;;  %v3399_v2 = vld [vmem:[#allocation9 + $0x4c] sm:$0xf]  ;;  %v2402_v3 = vld [vmem:[#allocation9 + $0x58] sm:$0xf0]  ;;  %v2397_v8 = vor.u32 %v3398_v61, %v2394_v63 }
  0x28   :  { %351 = vmatpush.bf16.msra.mxu2 %v2433_v46  ;;  %v2376_v5 = vld [vmem:[#allocation9 + $0x20] sm:$0xf]  ;;  %v3396_v6 = vld [vmem:[#allocation9 + $0x2c] sm:$0xf0]  ;;  %v3394_v7 = vld [vmem:[#allocation9 + $0x24] sm:$0xf]  ;;  %v2401_v9 = vor.u32 %v3401_v1, %v2400_v0  ;;  %v2405_v13 = vor.u32 %v3399_v2, %v2402_v3 }
  0x29   :  { %364 = vmatpush.bf16.msra.mxu3 %v2437_v50  ;;  %v2378_v10 = vld [vmem:[#allocation9 + $0x30] sm:$0xf0]  ;;  %v2384_v11 = vld [vmem:[#allocation9 + $0x28] sm:$0xf]  ;;  %v3397_v12 = vld [vmem:[#allocation9 + $0x34] sm:$0xf0]  ;;  %v2377_v19 = vor.u32 %v3396_v6, %v2376_v5 }
  0x2a   :  { %v3395_v14 = vld [vmem:[#allocation9 + $0x2c] sm:$0xf]  ;;  %s108_s0 = scalar_lea.vmem [#allocation4], %s3913_s11  ;;  %v2386_v16 = vld [vmem:[#allocation9 + $0x38] sm:$0xf0]  ;;  %v2381_v23 = vor.u32 %v3394_v7, %v2378_v10  ;;  %v2385_v24 = vor.u32 %v3397_v12, %v2384_v11  ;;  %s2341_s16 = sshll.u32 %s3987_s7, 4  ;;  %s2342_s16 = int_to_ptr.hbm [resolvable:$true] %s2341_s16 }
  0x2b   :  { %326 = vmatpush.bf16.msra.mxu0 %v2409_v56  ;;  %339 = vmatpush.bf16.msra.mxu1 %v2413_v57  ;;  %v3916_v15 = vld [vmem:[%s108_s0] ss:$8 sm:$0x3]  ;;  %v2360_v17 = vld [vmem:[#allocation9] sm:$0xf]  ;;  %v2389_v28 = vor.u32 %v3395_v14, %v2386_v16 }
  0x2c   :  { %352 = vmatpush.bf16.msra.mxu2 %v2417_v58  ;;  %v112_v18 = vrot.slane %v3916_v15, 1  ;;  %v3392_v20 = vld [vmem:[#allocation9 + $0xc] sm:$0xf0]  ;;  %v3390_v21 = vld [vmem:[#allocation9 + $0x4] sm:$0xf] }
  0x2d   :  { %365 = vmatpush.bf16.msra.mxu3 %v2421_v62  ;;  %v2362_v22 = vld [vmem:[#allocation9 + $0x10] sm:$0xf0]  ;;  %v2368_v25 = vld [vmem:[#allocation9 + $0x8] sm:$0xf]  ;;  %v3393_v26 = vld [vmem:[#allocation9 + $0x14] sm:$0xf0]  ;;  %v2361_v35 = vor.u32 %v3392_v20, %v2360_v17 }
  0x2e   :  { %v114_v27 = vmul.f32 0.5, %v112_v18  ;;  %v3391_v29 = vld [vmem:[#allocation9 + $0xc] sm:$0xf]  ;;  %v2370_v30 = vld [vmem:[#allocation9 + $0x18] sm:$0xf0]  ;;  %v2365_v39 = vor.u32 %v3390_v21, %v2362_v22  ;;  %v2369_v40 = vor.u32 %v3393_v26, %v2368_v25 }
  0x2f   :  { %327 = vmatpush.bf16.msra.mxu0 %v2393_v4  ;;  %340 = vmatpush.bf16.msra.mxu1 %v2397_v8  ;;  %v2684_v31 = vld [vmem:[#allocation10 + $0x188] sm:$0xf]  ;;  %v3474_v33 = vld [vmem:[#allocation10 + $0x1a0] sm:$0xf0]  ;;  %v2373_v43 = vor.u32 %v3391_v29, %v2370_v30  ;;  %v2656_v46 = vld [vmem:[#allocation10 + $0x150] sm:$0xf] }
  0x30   :  { %353 = vmatpush.bf16.msra.mxu2 %v2401_v9  ;;  %v115_v32 = vmul.f32 1.442695, %v114_v27  ;;  %v2908_v34 = vld [vmem:[#allocation10 + $0x348] sm:$0xf]  ;;  %v3530_v36 = vld [vmem:[#allocation10 + $0x360] sm:$0xf0]  ;;  %v2685_v44 = vor.u32 %v3474_v33, %v2684_v31 }
  0x31   :  { %366 = vmatpush.bf16.msra.mxu3 %v2405_v13  ;;  %v3132_v37 = vld [vmem:[#allocation10 + $0x508] sm:$0xf]  ;;  %v3586_v38 = vld [vmem:[#allocation10 + $0x520] sm:$0xf0]  ;;  %v2909_v45 = vor.u32 %v3530_v36, %v2908_v34  ;;  %v3467_v47 = vld [vmem:[#allocation10 + $0x168] sm:$0xf0] }
  0x32   :  { %3656 = vpow2.f32 %v115_v32  ;;  %v3356_v41 = vld [vmem:[#allocation10 + $0x6c8] sm:$0xf]  ;;  %v3642_v42 = vld [vmem:[#allocation10 + $0x6e0] sm:$0xf0]  ;;  %v2880_v48 = vld [vmem:[#allocation10 + $0x310] sm:$0xf]  ;;  %v3133_v49 = vor.u32 %v3586_v38, %v3132_v37  ;;  %v2657_v57 = vor.u32 %v3467_v47, %v2656_v46 }
  0x33   :  { %328 = vmatpush.bf16.msra.mxu0 %v2377_v19  ;;  %341 = vmatpush.bf16.msra.mxu1 %v2381_v23  ;;  %v3523_v50 = vld [vmem:[#allocation10 + $0x328] sm:$0xf0]  ;;  %v3357_v51 = vor.u32 %v3642_v42, %v3356_v41  ;;  %v3104_v52 = vld [vmem:[#allocation10 + $0x4d0] sm:$0xf]  ;;  %v110_v54 = vld [vmem:[#allocation7] sm:$0x1] }
  0x34   :  { %354 = vmatpush.bf16.msra.mxu2 %v2385_v24  ;;  %v3579_v53 = vld [vmem:[#allocation10 + $0x4e8] sm:$0xf0]  ;;  %v3328_v55 = vld [vmem:[#allocation10 + $0x690] sm:$0xf]  ;;  %v2881_v59 = vor.u32 %v3523_v50, %v2880_v48  ;;  %v2628_v62 = vld [vmem:[#allocation10 + $0x118] sm:$0xf] }
  0x35   :  { %367 = vmatpush.bf16.msra.mxu3 %v2389_v28  ;;  %v3635_v56 = vld [vmem:[#allocation10 + $0x6a8] sm:$0xf0]  ;;  %v3105_v60 = vor.u32 %v3579_v53, %v3104_v52  ;;  %v3460_v63 = vld [vmem:[#allocation10 + $0x130] sm:$0xf0]  ;;  %v2852_v1 = vld [vmem:[#allocation10 + $0x2d8] sm:$0xf] }
  0x36   :  { %v3329_v0 = vor.u32 %v3635_v56, %v3328_v55  ;;  %v3516_v2 = vld [vmem:[#allocation10 + $0x2f0] sm:$0xf0]  ;;  %v3076_v3 = vld [vmem:[#allocation10 + $0x498] sm:$0xf]  ;;  %v2629_v9 = vor.u32 %v3460_v63, %v2628_v62  ;;  %v2600_v11 = vld [vmem:[#allocation10 + $0xe0] sm:$0xf] }
  0x37   :  { %329 = vmatpush.bf16.msra.mxu0 %v2361_v35  ;;  %342 = vmatpush.bf16.msra.mxu1 %v2365_v39  ;;  %v3572_v5 = vld [vmem:[#allocation10 + $0x4b0] sm:$0xf0]  ;;  %v3300_v6 = vld [vmem:[#allocation10 + $0x658] sm:$0xf]  ;;  %v2853_v10 = vor.u32 %v3516_v2, %v2852_v1  ;;  %v3453_v12 = vld [vmem:[#allocation10 + $0xf8] sm:$0xf0] }
  0x38   :  { %355 = vmatpush.bf16.msra.mxu2 %v2369_v40  ;;  %v3657_v58 = vpop.eup %3656  ;;  %v3628_v7 = vld [vmem:[#allocation10 + $0x670] sm:$0xf0]  ;;  %v2824_v13 = vld [vmem:[#allocation10 + $0x2a0] sm:$0xf]  ;;  %v3509_v14 = vld [vmem:[#allocation10 + $0x2b8] sm:$0xf0]  ;;  %v3077_v16 = vor.u32 %v3572_v5, %v3076_v3  ;;  %v2601_v21 = vor.u32 %v3453_v12, %v2600_v11 }
  0x39   :  { %368 = vmatpush.bf16.msra.mxu3 %v2373_v43  ;;  %v117_v61 = vmul.f32 %v3657_v58, %v110_v54  ;;  %v3301_v17 = vor.u32 %v3628_v7, %v3300_v6  ;;  %v3048_v18 = vld [vmem:[#allocation10 + $0x460] sm:$0xf]  ;;  %v3621_v20 = vld [vmem:[#allocation10 + $0x638] sm:$0xf0]  ;;  %v2825_v22 = vor.u32 %v3509_v14, %v2824_v13  ;;  %v2572_v23 = vld [vmem:[#allocation10 + $0xa8] sm:$0xf] }
  0x3a   :  { %v3272_v19 = vld [vmem:[#allocation10 + $0x620] sm:$0xf]  ;;  %v3446_v24 = vld [vmem:[#allocation10 + $0xc0] sm:$0xf0]  ;;  %v2796_v25 = vld [vmem:[#allocation10 + $0x268] sm:$0xf] }
  0x3b   :  { %1806 = vmatpush.bf16.msrb.mxu0 %v2685_v44  ;;  %1819 = vmatpush.bf16.msrb.mxu1 %v2909_v45  ;;  %v118_v4 = vadd.f32 %v117_v61, %v3916_v15  ;;  %v3565_v15 = vld [vmem:[#allocation10 + $0x478] sm:$0xf0]  ;;  %v3502_v26 = vld [vmem:[#allocation10 + $0x280] sm:$0xf0]  ;;  %v3273_v28 = vor.u32 %v3621_v20, %v3272_v19  ;;  %v3020_v29 = vld [vmem:[#allocation10 + $0x428] sm:$0xf]  ;;  %v2573_v33 = vor.u32 %v3446_v24, %v2572_v23 }
  0x3c   :  { %1832 = vmatpush.bf16.msrb.mxu2 %v3133_v49  ;;  %v3049_v27 = vor.u32 %v3565_v15, %v3048_v18  ;;  %v3558_v30 = vld [vmem:[#allocation10 + $0x440] sm:$0xf0]  ;;  %v3244_v31 = vld [vmem:[#allocation10 + $0x5e8] sm:$0xf]  ;;  %v2797_v34 = vor.u32 %v3502_v26, %v2796_v25  ;;  %v2544_v35 = vld [vmem:[#allocation10 + $0x70] sm:$0xf] }
  0x3d   :  { %1845 = vmatpush.bf16.msrb.mxu3 %v3357_v51  ;;  %v119_v8 = vpack.c.bf16 %v118_v4, %v118_v4  ;;  %v3614_v32 = vld [vmem:[#allocation10 + $0x600] sm:$0xf0]  ;;  %v3439_v36 = vld [vmem:[#allocation10 + $0x88] sm:$0xf0]  ;;  %v2768_v37 = vld [vmem:[#allocation10 + $0x230] sm:$0xf]  ;;  %v3021_v39 = vor.u32 %v3558_v30, %v3020_v29 }
  0x3e   :  { %v3495_v38 = vld [vmem:[#allocation10 + $0x248] sm:$0xf0]  ;;  %v3245_v40 = vor.u32 %v3614_v32, %v3244_v31  ;;  %v2992_v41 = vld [vmem:[#allocation10 + $0x3f0] sm:$0xf]  ;;  %v2545_v45 = vor.u32 %v3439_v36, %v2544_v35  ;;  %v2516_v47 = vld [vmem:[#allocation10 + $0x38] sm:$0xf] }
  0x3f   :  { %1807 = vmatpush.bf16.msrb.mxu0 %v2657_v57  ;;  %1820 = vmatpush.bf16.msrb.mxu1 %v2881_v59  ;;  %v3551_v42 = vld [vmem:[#allocation10 + $0x408] sm:$0xf0]  ;;  %v3216_v43 = vld [vmem:[#allocation10 + $0x5b0] sm:$0xf]  ;;  %v2769_v46 = vor.u32 %v3495_v38, %v2768_v37  ;;  %v3432_v48 = vld [vmem:[#allocation10 + $0x50] sm:$0xf0] }
  0x40   :  { %1833 = vmatpush.bf16.msrb.mxu2 %v3105_v60  ;;  %330 = vmatmul.bf16.vlgmr.msra.gmra.mxu0 %v119_v8  ;;  %v3607_v44 = vld [vmem:[#allocation10 + $0x5c8] sm:$0xf0]  ;;  %v2740_v49 = vld [vmem:[#allocation10 + $0x1f8] sm:$0xf]  ;;  %v3488_v50 = vld [vmem:[#allocation10 + $0x210] sm:$0xf0]  ;;  %v2993_v51 = vor.u32 %v3551_v42, %v2992_v41  ;;  %v2517_v58 = vor.u32 %v3432_v48, %v2516_v47 }
  0x41   :  { %1846 = vmatpush.bf16.msrb.mxu3 %v3329_v0  ;;  %343 = vmatmul.bf16.vlgmr.msra.gmra.mxu1 %v119_v8  ;;  %v3217_v52 = vor.u32 %v3607_v44, %v3216_v43  ;;  %v2964_v53 = vld [vmem:[#allocation10 + $0x3b8] sm:$0xf]  ;;  %v3544_v54 = vld [vmem:[#allocation10 + $0x3d0] sm:$0xf0]  ;;  %v2488_v57 = vld [vmem:[#allocation10] sm:$0xf]  ;;  %v2741_v59 = vor.u32 %v3488_v50, %v2740_v49 }
  0x42   :  { %356 = vmatmul.bf16.vlgmr.msra.gmra.mxu2 %v119_v8  ;;  %369 = vmatmul.bf16.vlgmr.msra.gmra.mxu3 %v119_v8  ;;  %v3188_v55 = vld [vmem:[#allocation10 + $0x578] sm:$0xf]  ;;  %v3600_v56 = vld [vmem:[#allocation10 + $0x590] sm:$0xf0]  ;;  %v3425_v60 = vld [vmem:[#allocation10 + $0x18] sm:$0xf0]  ;;  %v2965_v2 = vor.u32 %v3544_v54, %v2964_v53 }
  0x43   :  { %1808 = vmatpush.bf16.msrb.mxu0 %v2629_v9  ;;  %1821 = vmatpush.bf16.msrb.mxu1 %v2853_v10  ;;  %v2712_v61 = vld [vmem:[#allocation10 + $0x1c0] sm:$0xf]  ;;  %v3481_v62 = vld [vmem:[#allocation10 + $0x1d8] sm:$0xf0]  ;;  %v3471_v63 = vld [vmem:[#allocation10 + $0x18c] sm:$0xf]  ;;  %v3189_v3 = vor.u32 %v3600_v56, %v3188_v55  ;;  %v2489_v10 = vor.u32 %v3425_v60, %v2488_v57 }
  0x44   :  { %1834 = vmatpush.bf16.msrb.mxu2 %v3077_v16  ;;  %v2686_v0 = vld [vmem:[#allocation10 + $0x1a4] sm:$0xf0]  ;;  %v3527_v1 = vld [vmem:[#allocation10 + $0x34c] sm:$0xf]  ;;  %v2936_v5 = vld [vmem:[#allocation10 + $0x380] sm:$0xf]  ;;  %v2713_v11 = vor.u32 %v3481_v62, %v2712_v61 }
  0x45   :  { %1847 = vmatpush.bf16.msrb.mxu3 %v3301_v17  ;;  %v2910_v4 = vld [vmem:[#allocation10 + $0x364] sm:$0xf0]  ;;  %v3537_v6 = vld [vmem:[#allocation10 + $0x398] sm:$0xf0]  ;;  %v3160_v7 = vld [vmem:[#allocation10 + $0x540] sm:$0xf]  ;;  %v2689_v16 = vor.u32 %v3471_v63, %v2686_v0 }
  0x46   :  { %v3593_v8 = vld [vmem:[#allocation10 + $0x558] sm:$0xf0]  ;;  %v3583_v9 = vld [vmem:[#allocation10 + $0x50c] sm:$0xf]  ;;  %v3134_v12 = vld [vmem:[#allocation10 + $0x524] sm:$0xf0]  ;;  %v2913_v17 = vor.u32 %v3527_v1, %v2910_v4 }
  0x47   :  { %1809 = vmatpush.bf16.msrb.mxu0 %v2601_v21  ;;  %1822 = vmatpush.bf16.msrb.mxu1 %v2825_v22  ;;  %v3639_v13 = vld [vmem:[#allocation10 + $0x6cc] sm:$0xf]  ;;  %v3358_v14 = vld [vmem:[#allocation10 + $0x6e4] sm:$0xf0]  ;;  %v3464_v18 = vld [vmem:[#allocation10 + $0x154] sm:$0xf]  ;;  %v2937_v21 = vor.u32 %v3537_v6, %v2936_v5  ;;  %v3161_v22 = vor.u32 %v3593_v8, %v3160_v7  ;;  %v3137_v23 = vor.u32 %v3583_v9, %v3134_v12 }
  0x48   :  { %1835 = vmatpush.bf16.msrb.mxu2 %v3049_v27  ;;  %v2658_v15 = vld [vmem:[#allocation10 + $0x16c] sm:$0xf0]  ;;  %v3520_v19 = vld [vmem:[#allocation10 + $0x314] sm:$0xf]  ;;  %v3361_v24 = vor.u32 %v3639_v13, %v3358_v14  ;;  %v3457_v31 = vld [vmem:[#allocation10 + $0x11c] sm:$0xf] }
  0x49   :  { %1848 = vmatpush.bf16.msrb.mxu3 %v3273_v28  ;;  %v2882_v20 = vld [vmem:[#allocation10 + $0x32c] sm:$0xf0]  ;;  %v3576_v25 = vld [vmem:[#allocation10 + $0x4d4] sm:$0xf]  ;;  %v2661_v29 = vor.u32 %v3464_v18, %v2658_v15  ;;  %v2630_v32 = vld [vmem:[#allocation10 + $0x134] sm:$0xf0] }
  0x4a   :  { %v3106_v26 = vld [vmem:[#allocation10 + $0x4ec] sm:$0xf0]  ;;  %v3632_v27 = vld [vmem:[#allocation10 + $0x694] sm:$0xf]  ;;  %v2885_v30 = vor.u32 %v3520_v19, %v2882_v20  ;;  %v3569_v37 = vld [vmem:[#allocation10 + $0x49c] sm:$0xf]  ;;  %v2633_v41 = vor.u32 %v3457_v31, %v2630_v32 }
  0x4b   :  { %1810 = vmatpush.bf16.msrb.mxu0 %v2573_v33  ;;  %1823 = vmatpush.bf16.msrb.mxu1 %v2797_v34  ;;  %v3330_v28 = vld [vmem:[#allocation10 + $0x6ac] sm:$0xf0]  ;;  %v3513_v33 = vld [vmem:[#allocation10 + $0x2dc] sm:$0xf]  ;;  %v2854_v34 = vld [vmem:[#allocation10 + $0x2f4] sm:$0xf0]  ;;  %v3109_v35 = vor.u32 %v3576_v25, %v3106_v26 }
  0x4c   :  { %1836 = vmatpush.bf16.msrb.mxu2 %v3021_v39  ;;  %v3333_v36 = vor.u32 %v3632_v27, %v3330_v28  ;;  %v3078_v38 = vld [vmem:[#allocation10 + $0x4b4] sm:$0xf0]  ;;  %v3625_v39 = vld [vmem:[#allocation10 + $0x65c] sm:$0xf]  ;;  %v2857_v42 = vor.u32 %v3513_v33, %v2854_v34  ;;  %v3450_v43 = vld [vmem:[#allocation10 + $0xe4] sm:$0xf] }
  0x4d   :  { %1849 = vmatpush.bf16.msrb.mxu3 %v3245_v40  ;;  %v3302_v40 = vld [vmem:[#allocation10 + $0x674] sm:$0xf0]  ;;  %v2602_v44 = vld [vmem:[#allocation10 + $0xfc] sm:$0xf0]  ;;  %v3081_v47 = vor.u32 %v3569_v37, %v3078_v38  ;;  %v3562_v49 = vld [vmem:[#allocation10 + $0x464] sm:$0xf] }
  0x4e   :  { %v3305_v48 = vor.u32 %v3625_v39, %v3302_v40  ;;  %v3050_v50 = vld [vmem:[#allocation10 + $0x47c] sm:$0xf0]  ;;  %v2605_v53 = vor.u32 %v3450_v43, %v2602_v44  ;;  %v3443_v55 = vld [vmem:[#allocation10 + $0xac] sm:$0xf]  ;;  %v2574_v56 = vld [vmem:[#allocation10 + $0xc4] sm:$0xf0] }
  0x4f   :  { %1811 = vmatpush.bf16.msrb.mxu0 %v2545_v45  ;;  %1824 = vmatpush.bf16.msrb.mxu1 %v2769_v46  ;;  %v3506_v45 = vld [vmem:[#allocation10 + $0x2a4] sm:$0xf]  ;;  %v2826_v46 = vld [vmem:[#allocation10 + $0x2bc] sm:$0xf0]  ;;  %v3499_v57 = vld [vmem:[#allocation10 + $0x26c] sm:$0xf]  ;;  %v2577_v61 = vor.u32 %v3443_v55, %v2574_v56 }
  0x50   :  { %1837 = vmatpush.bf16.msrb.mxu2 %v2993_v51  ;;  %v3618_v51 = vld [vmem:[#allocation10 + $0x624] sm:$0xf]  ;;  %v2829_v54 = vor.u32 %v3506_v45, %v2826_v46  ;;  %v3436_v63 = vld [vmem:[#allocation10 + $0x74] sm:$0xf]  ;;  %v2546_v0 = vld [vmem:[#allocation10 + $0x8c] sm:$0xf0] }
  0x51   :  { %1850 = vmatpush.bf16.msrb.mxu3 %v3217_v52  ;;  %v3274_v52 = vld [vmem:[#allocation10 + $0x63c] sm:$0xf0]  ;;  %v3492_v1 = vld [vmem:[#allocation10 + $0x234] sm:$0xf]  ;;  %v3555_v5 = vld [vmem:[#allocation10 + $0x42c] sm:$0xf] }
  0x52   :  { %v3277_v60 = vor.u32 %v3618_v51, %v3274_v52  ;;  %v3022_v6 = vld [vmem:[#allocation10 + $0x444] sm:$0xf0]  ;;  %v3611_v7 = vld [vmem:[#allocation10 + $0x5ec] sm:$0xf]  ;;  %v2518_v12 = vld [vmem:[#allocation10 + $0x54] sm:$0xf0] }
  0x53   :  { %1812 = vmatpush.bf16.msrb.mxu0 %v2517_v58  ;;  %1825 = vmatpush.bf16.msrb.mxu1 %v2741_v59  ;;  %v2798_v58 = vld [vmem:[#allocation10 + $0x284] sm:$0xf0]  ;;  %v3053_v59 = vor.u32 %v3562_v49, %v3050_v50  ;;  %v3025_v8 = vor.u32 %v3555_v5, %v3022_v6  ;;  %v3485_v14 = vld [vmem:[#allocation10 + $0x1fc] sm:$0xf]  ;;  %v3548_v18 = vld [vmem:[#allocation10 + $0x3f4] sm:$0xf] }
  0x54   :  { %1838 = vmatpush.bf16.msrb.mxu2 %v2965_v2  ;;  %v2801_v62 = vor.u32 %v3499_v57, %v2798_v58  ;;  %v2770_v2 = vld [vmem:[#allocation10 + $0x24c] sm:$0xf0]  ;;  %v3246_v9 = vld [vmem:[#allocation10 + $0x604] sm:$0xf0]  ;;  %v3604_v19 = vld [vmem:[#allocation10 + $0x5b4] sm:$0xf] }
  0x55   :  { %1851 = vmatpush.bf16.msrb.mxu3 %v3189_v3  ;;  %v2549_v3 = vor.u32 %v3436_v63, %v2546_v0  ;;  %v2773_v4 = vor.u32 %v3492_v1, %v2770_v2  ;;  %v2994_v15 = vld [vmem:[#allocation10 + $0x40c] sm:$0xf0]  ;;  %v3478_v25 = vld [vmem:[#allocation10 + $0x1c4] sm:$0xf]  ;;  %v2714_v27 = vld [vmem:[#allocation10 + $0x1dc] sm:$0xf0] }
  0x56   :  { %v2997_v20 = vor.u32 %v3548_v18, %v2994_v15  ;;  %v2717_v28 = vor.u32 %v3478_v25, %v2714_v27  ;;  %v3597_v32 = vld [vmem:[#allocation10 + $0x57c] sm:$0xf]  ;;  %v3190_v33 = vld [vmem:[#allocation10 + $0x594] sm:$0xf0]  ;;  %v3590_v38 = vld [vmem:[#allocation10 + $0x544] sm:$0xf] }
  0x57   :  { %1813 = vmatpush.bf16.msrb.mxu0 %v2489_v10  ;;  %1826 = vmatpush.bf16.msrb.mxu1 %v2713_v11  ;;  %v3249_v10 = vor.u32 %v3611_v7, %v3246_v9  ;;  %v3429_v11 = vld [vmem:[#allocation10 + $0x3c] sm:$0xf]  ;;  %v3193_v34 = vor.u32 %v3597_v32, %v3190_v33  ;;  %v3162_v39 = vld [vmem:[#allocation10 + $0x55c] sm:$0xf0]  ;;  %v2692_v46 = vld [vmem:[#allocation10 + $0x190] sm:$0xf] }
  0x58   :  { %1839 = vmatpush.bf16.msrb.mxu2 %v2937_v21  ;;  %v2521_v13 = vor.u32 %v3429_v11, %v2518_v12  ;;  %v3218_v21 = vld [vmem:[#allocation10 + $0x5cc] sm:$0xf0]  ;;  %v3165_v40 = vor.u32 %v3590_v38, %v3162_v39  ;;  %v3475_v49 = vld [vmem:[#allocation10 + $0x1a8] sm:$0xf0]  ;;  %v2664_v58 = vld [vmem:[#allocation10 + $0x158] sm:$0xf] }
  0x59   :  { %1852 = vmatpush.bf16.msrb.mxu3 %v3161_v22  ;;  %v3221_v22 = vor.u32 %v3604_v19, %v3218_v21  ;;  %v2916_v50 = vld [vmem:[#allocation10 + $0x350] sm:$0xf]  ;;  %v3531_v51 = vld [vmem:[#allocation10 + $0x368] sm:$0xf0]  ;;  %v2693_v56 = vor.u32 %v3475_v49, %v2692_v46  ;;  %v3524_v63 = vld [vmem:[#allocation10 + $0x330] sm:$0xf0] }
  0x5a   :  { %v2917_v57 = vor.u32 %v3531_v51, %v2916_v50  ;;  %v3364_v5 = vld [vmem:[#allocation10 + $0x6d0] sm:$0xf]  ;;  %v3643_v11 = vld [vmem:[#allocation10 + $0x6e8] sm:$0xf0]  ;;  %v2636_v12 = vld [vmem:[#allocation10 + $0x120] sm:$0xf] }
  0x5b   :  { %1858 = vmatpush.bf16.msra.mxu0 %v2689_v16  ;;  %1871 = vmatpush.bf16.msra.mxu1 %v2913_v17  ;;  %v2742_v16 = vld [vmem:[#allocation10 + $0x214] sm:$0xf0]  ;;  %v3365_v19 = vor.u32 %v3643_v11, %v3364_v5  ;;  %v3636_v27 = vld [vmem:[#allocation10 + $0x6b0] sm:$0xf0]  ;;  %v3573_v39 = vld [vmem:[#allocation10 + $0x4b8] sm:$0xf0] }
  0x5c   :  { %1884 = vmatpush.bf16.msra.mxu2 %v3137_v23  ;;  %v2745_v17 = vor.u32 %v3485_v14, %v2742_v16  ;;  %v3422_v23 = vld [vmem:[#allocation10 + $0x4] sm:$0xf]  ;;  %v2860_v14 = vld [vmem:[#allocation10 + $0x2e0] sm:$0xf]  ;;  %v3517_v16 = vld [vmem:[#allocation10 + $0x2f8] sm:$0xf0] }
  0x5d   :  { %1897 = vmatpush.bf16.msra.mxu3 %v3361_v24  ;;  %v2490_v24 = vld [vmem:[#allocation10 + $0x1c] sm:$0xf0]  ;;  %v3112_v21 = vld [vmem:[#allocation10 + $0x4d8] sm:$0xf]  ;;  %v2861_v25 = vor.u32 %v3517_v16, %v2860_v14  ;;  %v3566_v49 = vld [vmem:[#allocation10 + $0x480] sm:$0xf0] }
  0x5e   :  { %v2493_v26 = vor.u32 %v3422_v23, %v2490_v24  ;;  %v3280_v50 = vld [vmem:[#allocation10 + $0x628] sm:$0xf]  ;;  %v3622_v51 = vld [vmem:[#allocation10 + $0x640] sm:$0xf0]  ;;  %v3433_v5 = vld [vmem:[#allocation10 + $0x58] sm:$0xf0] }
  0x5f   :  { %1859 = vmatpush.bf16.msra.mxu0 %v2661_v29  ;;  %1872 = vmatpush.bf16.msra.mxu1 %v2885_v30  ;;  %v3541_v29 = vld [vmem:[#allocation10 + $0x3bc] sm:$0xf]  ;;  %v2966_v30 = vld [vmem:[#allocation10 + $0x3d4] sm:$0xf0]  ;;  %v3552_v11 = vld [vmem:[#allocation10 + $0x410] sm:$0xf0] }
  0x60   :  { %1885 = vmatpush.bf16.msra.mxu2 %v3109_v35  ;;  %v2969_v31 = vor.u32 %v3541_v29, %v2966_v30  ;;  %v3534_v35 = vld [vmem:[#allocation10 + $0x384] sm:$0xf]  ;;  %v2832_v30 = vld [vmem:[#allocation10 + $0x2a8] sm:$0xf] }
  0x61   :  { %1898 = vmatpush.bf16.msra.mxu3 %v3333_v36  ;;  %v2938_v36 = vld [vmem:[#allocation10 + $0x39c] sm:$0xf0]  ;;  %v3454_v29 = vld [vmem:[#allocation10 + $0x100] sm:$0xf0] }
  0x62   :  { %v2941_v37 = vor.u32 %v3534_v35, %v2938_v36  ;;  %v3084_v36 = vld [vmem:[#allocation10 + $0x4a0] sm:$0xf] }
  0x63   :  { %1860 = vmatpush.bf16.msra.mxu0 %v2633_v41  ;;  %1873 = vmatpush.bf16.msra.mxu1 %v2857_v42  ;;  %v152_v41 = vld [vmem:[%s3984_s4] sm:$0xf]  ;;  %v3085_v46 = vor.u32 %v3573_v39, %v3084_v36  ;;  %s3847_s4 = smov [#allocation13]  }
  0x64   :  { %1886 = vmatpush.bf16.msra.mxu2 %v3081_v47  ;;  %v314_v42 = vperm.slane %v152_v41, 0  ;;  %v315_v43 = vperm.slane %v152_v41, 1  ;;  %v317_v55 = vperm.slane %v152_v41, 3  ;;  %v3465_v36 = vld [vmem:[#allocation10 + $0x15c] sm:$0xf]  ;;  %s2339_s14 = sshll.u32 %s3847_s4, 4  ;;  %s2340_s14 = int_to_ptr.vmem [resolvable:$true] %s2339_s14 }
  0x65   :  { %1899 = vmatpush.bf16.msra.mxu3 %v3305_v48 }
  0x67   :  { %1861 = vmatpush.bf16.msra.mxu0 %v2605_v53  ;;  %1874 = vmatpush.bf16.msra.mxu1 %v2829_v54  ;;  %v316_v54 = vperm.slane %v152_v41, 2  ;;  %v3629_v41 = vld [vmem:[#allocation10 + $0x678] sm:$0xf0] }
  0x68   :  { %1887 = vmatpush.bf16.msra.mxu2 %v3053_v59  ;;  %v3468_v59 = vld [vmem:[#allocation10 + $0x170] sm:$0xf0] }
  0x69   :  { %1900 = vmatpush.bf16.msra.mxu3 %v3277_v60  ;;  %v2665_v2 = vor.u32 %v3468_v59, %v2664_v58  ;;  %v3281_v59 = vor.u32 %v3622_v51, %v3280_v50 }
  0x6b   :  { %1862 = vmatpush.bf16.msra.mxu0 %v2577_v61  ;;  %1875 = vmatpush.bf16.msra.mxu1 %v2801_v62  ;;  %v2888_v62 = vld [vmem:[#allocation10 + $0x318] sm:$0xf] }
  0x6c   :  { %1888 = vmatpush.bf16.msra.mxu2 %v3025_v8 }
  0x6d   :  { %1901 = vmatpush.bf16.msra.mxu3 %v3249_v10  ;;  %v2889_v10 = vor.u32 %v3524_v63, %v2888_v62  ;;  %v3028_v62 = vld [vmem:[#allocation10 + $0x430] sm:$0xf]  ;;  %v3559_v63 = vld [vmem:[#allocation10 + $0x448] sm:$0xf0] }
  0x6f   :  { %1863 = vmatpush.bf16.msra.mxu0 %v2549_v3  ;;  %1876 = vmatpush.bf16.msra.mxu1 %v2773_v4  ;;  %v3140_v3 = vld [vmem:[#allocation10 + $0x510] sm:$0xf]  ;;  %v3587_v4 = vld [vmem:[#allocation10 + $0x528] sm:$0xf0] }
  0x70   :  { %1889 = vmatpush.bf16.msra.mxu2 %v2997_v20  ;;  %v3141_v15 = vor.u32 %v3587_v4, %v3140_v3  ;;  %v2524_v4 = vld [vmem:[#allocation10 + $0x40] sm:$0xf] }
  0x71   :  { %1902 = vmatpush.bf16.msra.mxu3 %v3221_v22  ;;  %v3580_v22 = vld [vmem:[#allocation10 + $0x4f0] sm:$0xf0]  ;;  %v2525_v14 = vor.u32 %v3433_v5, %v2524_v4  ;;  %v3451_v4 = vld [vmem:[#allocation10 + $0xec] sm:$0xf]  ;;  %v2610_v5 = vld [vmem:[#allocation10 + $0x104] sm:$0xf0] }
  0x73   :  { %1864 = vmatpush.bf16.msra.mxu0 %v2521_v13  ;;  %1877 = vmatpush.bf16.msra.mxu1 %v2745_v17  ;;  %v3461_v13 = vld [vmem:[#allocation10 + $0x138] sm:$0xf0] }
  0x74   :  { %1890 = vmatpush.bf16.msra.mxu2 %v2969_v31  ;;  %v2637_v20 = vor.u32 %v3461_v13, %v2636_v12  ;;  %v3510_v31 = vld [vmem:[#allocation10 + $0x2c0] sm:$0xf0]  ;;  %v3224_v12 = vld [vmem:[#allocation10 + $0x5b8] sm:$0xf]  ;;  %v3608_v13 = vld [vmem:[#allocation10 + $0x5d0] sm:$0xf0] }
  0x75   :  { %1903 = vmatpush.bf16.msra.mxu3 %v3193_v34  ;;  %v3113_v34 = vor.u32 %v3580_v22, %v3112_v21  ;;  %v2833_v38 = vor.u32 %v3510_v31, %v2832_v30  ;;  %v2694_v21 = vld [vmem:[#allocation10 + $0x1ac] sm:$0xf0]  ;;  %v3196_v30 = vld [vmem:[#allocation10 + $0x580] sm:$0xf]  ;;  %v3601_v31 = vld [vmem:[#allocation10 + $0x598] sm:$0xf0] }
  0x77   :  { %1865 = vmatpush.bf16.msra.mxu0 %v2493_v26  ;;  %1878 = vmatpush.bf16.msra.mxu1 %v2717_v28  ;;  %v3336_v26 = vld [vmem:[#allocation10 + $0x698] sm:$0xf]  ;;  %v2608_v28 = vld [vmem:[#allocation10 + $0xe8] sm:$0xf] }
  0x78   :  { %1891 = vmatpush.bf16.msra.mxu2 %v2941_v37  ;;  %v3337_v35 = vor.u32 %v3636_v27, %v3336_v26  ;;  %v2609_v37 = vor.u32 %v3454_v29, %v2608_v28  ;;  %v3528_v26 = vld [vmem:[#allocation10 + $0x354] sm:$0xf]  ;;  %v2918_v27 = vld [vmem:[#allocation10 + $0x36c] sm:$0xf0]  ;;  %v2972_v28 = vld [vmem:[#allocation10 + $0x3c0] sm:$0xf] }
  0x79   :  { %1904 = vmatpush.bf16.msra.mxu3 %v3165_v40  ;;  %v3308_v40 = vld [vmem:[#allocation10 + $0x660] sm:$0xf]  ;;  %v3545_v29 = vld [vmem:[#allocation10 + $0x3d8] sm:$0xf0] }
  0x7a   :  { %v2973_v39 = vor.u32 %v3545_v29, %v2972_v28 }
  0xbd   :  { %v331_v44 = vpop.f32.mrf.mxu0 }
  0xbe   :  { %v344_v45 = vpop.f32.mrf.mxu1  ;;  %v332_v47 = vadd.f32 %v331_v44, %v314_v42  ;;  %v2580_v42 = vld [vmem:[#allocation10 + $0xb0] sm:$0xf] }
  0xbf   :  { %v345_v48 = vadd.f32 %v344_v45, %v315_v43  ;;  %v3447_v43 = vld [vmem:[#allocation10 + $0xc8] sm:$0xf0]  ;;  %v2804_v44 = vld [vmem:[#allocation10 + $0x270] sm:$0xf] }
  0xc0   :  { %v374_v52 = vmax.f32 %v332_v47, 0.0  ;;  %v3503_v45 = vld [vmem:[#allocation10 + $0x288] sm:$0xf0]  ;;  %v3309_v47 = vor.u32 %v3629_v41, %v3308_v40  ;;  %v3197_v40 = vor.u32 %v3601_v31, %v3196_v30  ;;  %v2890_v41 = vld [vmem:[#allocation10 + $0x334] sm:$0xf0] }
  0xc1   :  { %v375_v53 = vmax.f32 %v345_v48, 0.0  ;;  %v3056_v48 = vld [vmem:[#allocation10 + $0x468] sm:$0xf]  ;;  %v3437_v30 = vld [vmem:[#allocation10 + $0x7c] sm:$0xf] }
  0xc2   :  { %v3923_v60 = vpack.c.bf16 %v374_v52, %v374_v52  ;;  %v2581_v52 = vor.u32 %v3447_v43, %v2580_v42  ;;  %v3057_v58 = vor.u32 %v3566_v49, %v3056_v48  ;;  %v2944_v42 = vld [vmem:[#allocation10 + $0x388] sm:$0xf]  ;;  %v3538_v43 = vld [vmem:[#allocation10 + $0x3a0] sm:$0xf0]  ;;  %v3640_v48 = vld [vmem:[#allocation10 + $0x6d4] sm:$0xf] }
  0xc3   :  { %v3925_v61 = vpack.c.bf16 %v375_v53, %v375_v53  ;;  %v2805_v53 = vor.u32 %v3503_v45, %v2804_v44  ;;  %v3168_v44 = vld [vmem:[#allocation10 + $0x548] sm:$0xf]  ;;  %v3594_v45 = vld [vmem:[#allocation10 + $0x560] sm:$0xf0]  ;;  %v3366_v49 = vld [vmem:[#allocation10 + $0x6ec] sm:$0xf0] }
  0xc4   :  { %1814 = vmatmul.bf16.vlgmr.msrb.gmra.mxu0 %v3923_v60  ;;  %v2554_v31 = vld [vmem:[#allocation10 + $0x94] sm:$0xf0] }
  0xc5   :  { %v357_v0 = vpop.f32.mrf.mxu2  ;;  %v370_v1 = vpop.f32.mrf.mxu3  ;;  %1827 = vmatmul.bf16.vlgmr.msrb.gmra.mxu1 %v3925_v61  ;;  %1910 = vmatpush.bf16.msrb.mxu0 %v2693_v56  ;;  %v2776_v56 = vld [vmem:[#allocation10 + $0x238] sm:$0xf] }
  0xc6   :  { %v358_v6 = vadd.f32 %v357_v0, %v316_v54  ;;  %v371_v7 = vadd.f32 %v370_v1, %v317_v55  ;;  %1923 = vmatpush.bf16.msrb.mxu1 %v2917_v57  ;;  %v333_v8 = vpop.f32.mrf.mxu0  ;;  %v346_v9 = vpop.f32.mrf.mxu1  ;;  %v2552_v54 = vld [vmem:[#allocation10 + $0x78] sm:$0xf]  ;;  %v3440_v55 = vld [vmem:[#allocation10 + $0x90] sm:$0xf0]  ;;  %v3252_v0 = vld [vmem:[#allocation10 + $0x5f0] sm:$0xf] }
  0xc7   :  { %v3496_v57 = vld [vmem:[#allocation10 + $0x250] sm:$0xf0]  ;;  %v3615_v1 = vld [vmem:[#allocation10 + $0x608] sm:$0xf0]  ;;  %v3029_v8 = vor.u32 %v3559_v63, %v3028_v62  ;;  %v3577_v62 = vld [vmem:[#allocation10 + $0x4dc] sm:$0xf] }
  0xc8   :  { %v376_v17 = vmax.f32 %v358_v6, 0.0  ;;  %v377_v18 = vmax.f32 %v371_v7, 0.0  ;;  %v2777_v3 = vor.u32 %v3496_v57, %v2776_v56  ;;  %v2748_v6 = vld [vmem:[#allocation10 + $0x200] sm:$0xf]  ;;  %v3489_v7 = vld [vmem:[#allocation10 + $0x218] sm:$0xf0]  ;;  %v3253_v9 = vor.u32 %v3615_v1, %v3252_v0 }
  0xc9   :  { %1911 = vmatpush.bf16.msrb.mxu0 %v2665_v2  ;;  %v2553_v2 = vor.u32 %v3440_v55, %v2552_v54  ;;  %v2749_v16 = vor.u32 %v3489_v7, %v2748_v6  ;;  %v3169_v54 = vor.u32 %v3594_v45, %v3168_v44  ;;  %v2638_v55 = vld [vmem:[#allocation10 + $0x13c] sm:$0xf0]  ;;  %v3514_v56 = vld [vmem:[#allocation10 + $0x2e4] sm:$0xf]  ;;  %v3114_v63 = vld [vmem:[#allocation10 + $0x4f4] sm:$0xf0] }
  0xca   :  { %v3929_v23 = vpack.c.bf16 %v376_v17, %v376_v17  ;;  %v3931_v24 = vpack.c.bf16 %v377_v18, %v377_v18  ;;  %1924 = vmatpush.bf16.msrb.mxu1 %v2889_v10  ;;  %v3000_v10 = vld [vmem:[#allocation10 + $0x3f8] sm:$0xf]  ;;  %v2496_v17 = vld [vmem:[#allocation10 + $0x8] sm:$0xf]  ;;  %v3426_v18 = vld [vmem:[#allocation10 + $0x20] sm:$0xf0] }
  0xcb   :  { %v3001_v22 = vor.u32 %v3552_v11, %v3000_v10  ;;  %v2862_v57 = vld [vmem:[#allocation10 + $0x2fc] sm:$0xf0]  ;;  %v3633_v0 = vld [vmem:[#allocation10 + $0x69c] sm:$0xf]  ;;  %v3338_v1 = vld [vmem:[#allocation10 + $0x6b4] sm:$0xf0] }
  0xcc   :  { %1840 = vmatmul.bf16.vlgmr.msrb.gmra.mxu2 %v3929_v23  ;;  %1853 = vmatmul.bf16.vlgmr.msrb.gmra.mxu3 %v3931_v24  ;;  %v3507_v6 = vld [vmem:[#allocation10 + $0x2ac] sm:$0xf]  ;;  %v2834_v7 = vld [vmem:[#allocation10 + $0x2c4] sm:$0xf0]  ;;  %v3570_v10 = vld [vmem:[#allocation10 + $0x4a4] sm:$0xf] }
  0xcd   :  { %1936 = vmatpush.bf16.msrb.mxu2 %v3141_v15  ;;  %1949 = vmatpush.bf16.msrb.mxu3 %v3365_v19  ;;  %v359_v32 = vpop.f32.mrf.mxu2  ;;  %v372_v33 = vpop.f32.mrf.mxu3  ;;  %v2720_v15 = vld [vmem:[#allocation10 + $0x1c8] sm:$0xf]  ;;  %v3482_v19 = vld [vmem:[#allocation10 + $0x1e0] sm:$0xf0]  ;;  %v3086_v11 = vld [vmem:[#allocation10 + $0x4bc] sm:$0xf0] }
  0xce   :  { %1912 = vmatpush.bf16.msrb.mxu0 %v2637_v20  ;;  %1925 = vmatpush.bf16.msrb.mxu1 %v2861_v25  ;;  %v3472_v20 = vld [vmem:[#allocation10 + $0x194] sm:$0xf]  ;;  %v3225_v25 = vor.u32 %v3608_v13, %v3224_v12  ;;  %v2497_v32 = vor.u32 %v3426_v18, %v2496_v17  ;;  %v2721_v33 = vor.u32 %v3482_v19, %v2720_v15  ;;  %v3626_v12 = vld [vmem:[#allocation10 + $0x664] sm:$0xf]  ;;  %v3310_v13 = vld [vmem:[#allocation10 + $0x67c] sm:$0xf0] }
  0xcf   :  { %v3444_v17 = vld [vmem:[#allocation10 + $0xb4] sm:$0xf]  ;;  %v2582_v18 = vld [vmem:[#allocation10 + $0xcc] sm:$0xf0]  ;;  %v3486_v44 = vld [vmem:[#allocation10 + $0x204] sm:$0xf] }
  0xd0   :  { %v3500_v15 = vld [vmem:[#allocation10 + $0x274] sm:$0xf]  ;;  %v2806_v19 = vld [vmem:[#allocation10 + $0x28c] sm:$0xf0]  ;;  %v2585_v28 = vor.u32 %v3444_v17, %v2582_v18  ;;  %v2750_v45 = vld [vmem:[#allocation10 + $0x21c] sm:$0xf0] }
  0xd1   :  { %1937 = vmatpush.bf16.msrb.mxu2 %v3113_v34  ;;  %1950 = vmatpush.bf16.msrb.mxu3 %v3337_v35  ;;  %v2697_v34 = vor.u32 %v3472_v20, %v2694_v21  ;;  %v2921_v35 = vor.u32 %v3528_v26, %v2918_v27  ;;  %v3089_v20 = vor.u32 %v3570_v10, %v3086_v11  ;;  %v3619_v26 = vld [vmem:[#allocation10 + $0x62c] sm:$0xf]  ;;  %v3282_v27 = vld [vmem:[#allocation10 + $0x644] sm:$0xf0]  ;;  %v2672_v10 = vld [vmem:[#allocation10 + $0x160] sm:$0xf] }
  0xd2   :  { %1913 = vmatpush.bf16.msrb.mxu0 %v2609_v37  ;;  %1926 = vmatpush.bf16.msrb.mxu1 %v2833_v38  ;;  %v2666_v37 = vld [vmem:[#allocation10 + $0x174] sm:$0xf0]  ;;  %v3521_v38 = vld [vmem:[#allocation10 + $0x31c] sm:$0xf]  ;;  %v3313_v21 = vor.u32 %v3626_v12, %v3310_v13  ;;  %v2809_v29 = vor.u32 %v3500_v15, %v2806_v19  ;;  %v2896_v12 = vld [vmem:[#allocation10 + $0x320] sm:$0xf] }
  0xd3   :  { %v2669_v50 = vor.u32 %v3465_v36, %v2666_v37  ;;  %v2893_v51 = vor.u32 %v3521_v38, %v2890_v41  ;;  %v3556_v36 = vld [vmem:[#allocation10 + $0x434] sm:$0xf]  ;;  %v3030_v37 = vld [vmem:[#allocation10 + $0x44c] sm:$0xf0]  ;;  %v3469_v11 = vld [vmem:[#allocation10 + $0x178] sm:$0xf0] }
  0xd4   :  { %1866 = vmatmul.bf16.vlgmr.msra.gmra.mxu0 %v3923_v60  ;;  %v3612_v38 = vld [vmem:[#allocation10 + $0x5f4] sm:$0xf]  ;;  %v3535_v17 = vld [vmem:[#allocation10 + $0x38c] sm:$0xf]  ;;  %v2946_v18 = vld [vmem:[#allocation10 + $0x3a4] sm:$0xf0] }
  0xd5   :  { %1938 = vmatpush.bf16.msrb.mxu2 %v3085_v46  ;;  %1951 = vmatpush.bf16.msrb.mxu3 %v3309_v47  ;;  %v3584_v46 = vld [vmem:[#allocation10 + $0x514] sm:$0xf]  ;;  %v3142_v47 = vld [vmem:[#allocation10 + $0x52c] sm:$0xf0]  ;;  %v3591_v15 = vld [vmem:[#allocation10 + $0x54c] sm:$0xf] }
  0xd6   :  { %1879 = vmatmul.bf16.vlgmr.msra.gmra.mxu1 %v3925_v61  ;;  %1914 = vmatpush.bf16.msrb.mxu0 %v2581_v52  ;;  %v3458_v52 = vld [vmem:[#allocation10 + $0x124] sm:$0xf]  ;;  %v3170_v19 = vld [vmem:[#allocation10 + $0x564] sm:$0xf0] }
  0xd7   :  { %1927 = vmatpush.bf16.msrb.mxu1 %v2805_v53  ;;  %v2945_v53 = vor.u32 %v3538_v43, %v2944_v42  ;;  %v3430_v42 = vld [vmem:[#allocation10 + $0x44] sm:$0xf]  ;;  %v2526_v43 = vld [vmem:[#allocation10 + $0x5c] sm:$0xf0] }
  0xd9   :  { %1939 = vmatpush.bf16.msrb.mxu2 %v3057_v58  ;;  %1952 = vmatpush.bf16.msrb.mxu3 %v3281_v59  ;;  %v3145_v58 = vor.u32 %v3584_v46, %v3142_v47  ;;  %v3369_v59 = vor.u32 %v3640_v48, %v3366_v49  ;;  %v3033_v46 = vor.u32 %v3556_v36, %v3030_v37  ;;  %v3549_v48 = vld [vmem:[#allocation10 + $0x3fc] sm:$0xf]  ;;  %v3002_v49 = vld [vmem:[#allocation10 + $0x414] sm:$0xf0]  ;;  %v3120_v36 = vld [vmem:[#allocation10 + $0x4e0] sm:$0xf] }
  0xda   :  { %1915 = vmatpush.bf16.msrb.mxu0 %v2553_v2  ;;  %v2641_v2 = vor.u32 %v3458_v52, %v2638_v55  ;;  %v2529_v52 = vor.u32 %v3430_v42, %v2526_v43  ;;  %v2498_v55 = vld [vmem:[#allocation10 + $0x24] sm:$0xf0]  ;;  %v3581_v37 = vld [vmem:[#allocation10 + $0x4f8] sm:$0xf0]  ;;  %v2616_v42 = vld [vmem:[#allocation10 + $0xf0] sm:$0xf] }
  0xdb   :  { %1928 = vmatpush.bf16.msrb.mxu1 %v2777_v3  ;;  %v2865_v3 = vor.u32 %v3514_v56, %v2862_v57  ;;  %v3479_v56 = vld [vmem:[#allocation10 + $0x1cc] sm:$0xf]  ;;  %v2722_v57 = vld [vmem:[#allocation10 + $0x1e4] sm:$0xf0] }
  0xdc   :  { %1892 = vmatmul.bf16.vlgmr.msra.gmra.mxu2 %v3929_v23  ;;  %1905 = vmatmul.bf16.vlgmr.msra.gmra.mxu3 %v3931_v24  ;;  %v3455_v43 = vld [vmem:[#allocation10 + $0x108] sm:$0xf0] }
  0xdd   :  { %1940 = vmatpush.bf16.msrb.mxu2 %v3029_v8  ;;  %1953 = vmatpush.bf16.msrb.mxu3 %v3253_v9  ;;  %v3117_v8 = vor.u32 %v3577_v62, %v3114_v63  ;;  %v3341_v9 = vor.u32 %v3633_v0, %v3338_v1  ;;  %v3005_v62 = vor.u32 %v3549_v48, %v3002_v49  ;;  %v2924_v0 = vld [vmem:[#allocation10 + $0x358] sm:$0xf]  ;;  %v3532_v1 = vld [vmem:[#allocation10 + $0x370] sm:$0xf0]  ;;  %v3092_v48 = vld [vmem:[#allocation10 + $0x4a8] sm:$0xf] }
  0xde   :  { %1916 = vmatpush.bf16.msrb.mxu0 %v2525_v14  ;;  %v2613_v14 = vor.u32 %v3451_v4, %v2610_v5  ;;  %v3598_v4 = vld [vmem:[#allocation10 + $0x584] sm:$0xf]  ;;  %v3198_v5 = vld [vmem:[#allocation10 + $0x59c] sm:$0xf0] }
  0xdf   :  { %1929 = vmatpush.bf16.msrb.mxu1 %v2749_v16  ;;  %v2837_v16 = vor.u32 %v3507_v6, %v2834_v7  ;;  %v2725_v7 = vor.u32 %v3479_v56, %v2722_v57  ;;  %v3574_v49 = vld [vmem:[#allocation10 + $0x4c0] sm:$0xf0] }
  0xe0   :  { %v3093_v56 = vor.u32 %v3574_v49, %v3092_v48  ;;  %v3466_v48 = vld [vmem:[#allocation10 + $0x164] sm:$0xf]  ;;  %v2674_v49 = vld [vmem:[#allocation10 + $0x17c] sm:$0xf0] }
  0xe1   :  { %1941 = vmatpush.bf16.msrb.mxu2 %v3001_v22  ;;  %1954 = vmatpush.bf16.msrb.mxu3 %v3225_v25  ;;  %v3563_v22 = vld [vmem:[#allocation10 + $0x46c] sm:$0xf]  ;;  %v3058_v25 = vld [vmem:[#allocation10 + $0x484] sm:$0xf0] }
  0xe2   :  { %1917 = vmatpush.bf16.msrb.mxu0 %v2497_v32  ;;  %v3493_v32 = vld [vmem:[#allocation10 + $0x23c] sm:$0xf] }
  0xe3   :  { %1930 = vmatpush.bf16.msrb.mxu1 %v2721_v33  ;;  %v2778_v33 = vld [vmem:[#allocation10 + $0x254] sm:$0xf0] }
  0xe4   :  { %v2781_v41 = vor.u32 %v3493_v32, %v2778_v33 }
  0xe5   :  { %1942 = vmatpush.bf16.msrb.mxu2 %v2973_v39  ;;  %1955 = vmatpush.bf16.msrb.mxu3 %v3197_v40  ;;  %v3254_v39 = vld [vmem:[#allocation10 + $0x60c] sm:$0xf0]  ;;  %v2557_v40 = vor.u32 %v3437_v30, %v2554_v31  ;;  %v2644_v30 = vld [vmem:[#allocation10 + $0x128] sm:$0xf]  ;;  %v3462_v31 = vld [vmem:[#allocation10 + $0x140] sm:$0xf0] }
  0xe6   :  { %1962 = vmatpush.bf16.msra.mxu0 %v2697_v34  ;;  %1931 = vmatmul.bf16.vlgmr.msrb.gmra.mxu1 %v3925_v61  ;;  %v3061_v34 = vor.u32 %v3563_v22, %v3058_v25  ;;  %v3257_v47 = vor.u32 %v3612_v38, %v3254_v39  ;;  %v3372_v22 = vld [vmem:[#allocation10 + $0x6d8] sm:$0xf]  ;;  %v3644_v25 = vld [vmem:[#allocation10 + $0x6f0] sm:$0xf0]  ;;  %v3344_v38 = vld [vmem:[#allocation10 + $0x6a0] sm:$0xf] }
  0xe7   :  { %1975 = vmatpush.bf16.msra.mxu1 %v2921_v35  ;;  %1918 = vmatmul.bf16.vlgmr.msrb.gmra.mxu0 %v3923_v60  ;;  %v3285_v35 = vor.u32 %v3619_v26, %v3282_v27  ;;  %v2673_v26 = vor.u32 %v3469_v11, %v2672_v10  ;;  %v3373_v33 = vor.u32 %v3644_v25, %v3372_v22  ;;  %v3637_v39 = vld [vmem:[#allocation10 + $0x6b8] sm:$0xf0]  ;;  %v3036_v10 = vld [vmem:[#allocation10 + $0x438] sm:$0xf]  ;;  %v3560_v11 = vld [vmem:[#allocation10 + $0x450] sm:$0xf0] }
  0xe8   :  { %v3008_v22 = vld [vmem:[#allocation10 + $0x400] sm:$0xf]  ;;  %v3553_v25 = vld [vmem:[#allocation10 + $0x418] sm:$0xf0] }
  0xe9   :  { %1943 = vmatpush.bf16.msrb.mxu2 %v2945_v53  ;;  %1956 = vmatpush.bf16.msrb.mxu3 %v3169_v54  ;;  %v2753_v53 = vor.u32 %v3486_v44, %v2750_v45  ;;  %v3423_v54 = vld [vmem:[#allocation10 + $0xc] sm:$0xf]  ;;  %v3121_v44 = vor.u32 %v3581_v37, %v3120_v36  ;;  %v3345_v45 = vor.u32 %v3637_v39, %v3344_v38  ;;  %v3473_v36 = vld [vmem:[#allocation10 + $0x19c] sm:$0xf]  ;;  %v2702_v37 = vld [vmem:[#allocation10 + $0x1b4] sm:$0xf0] }
  0xea   :  { %1963 = vmatpush.bf16.msra.mxu0 %v2669_v50  ;;  %v3605_v50 = vld [vmem:[#allocation10 + $0x5bc] sm:$0xf]  ;;  %v2501_v6 = vor.u32 %v3423_v54, %v2498_v55  ;;  %v2588_v54 = vld [vmem:[#allocation10 + $0xb8] sm:$0xf]  ;;  %v3448_v55 = vld [vmem:[#allocation10 + $0xd0] sm:$0xf0] }
  0xeb   :  { %1976 = vmatpush.bf16.msra.mxu1 %v2893_v51  ;;  %v3226_v51 = vld [vmem:[#allocation10 + $0x5d4] sm:$0xf0]  ;;  %v3529_v38 = vld [vmem:[#allocation10 + $0x35c] sm:$0xf] }
  0xec   :  { %1944 = vmatmul.bf16.vlgmr.msrb.gmra.mxu2 %v3929_v23  ;;  %1957 = vmatmul.bf16.vlgmr.msrb.gmra.mxu3 %v3931_v24  ;;  %v3229_v63 = vor.u32 %v3605_v50, %v3226_v51  ;;  %v3316_v50 = vld [vmem:[#allocation10 + $0x668] sm:$0xf]  ;;  %v3630_v51 = vld [vmem:[#allocation10 + $0x680] sm:$0xf0]  ;;  %v2926_v39 = vld [vmem:[#allocation10 + $0x374] sm:$0xf0] }
  0xed   :  { %1988 = vmatpush.bf16.msra.mxu2 %v3145_v58  ;;  %2001 = vmatpush.bf16.msra.mxu3 %v3369_v59  ;;  %v2700_v58 = vld [vmem:[#allocation10 + $0x198] sm:$0xf]  ;;  %v3476_v59 = vld [vmem:[#allocation10 + $0x1b0] sm:$0xf0]  ;;  %v3317_v57 = vor.u32 %v3630_v51, %v3316_v50  ;;  %v3522_v50 = vld [vmem:[#allocation10 + $0x324] sm:$0xf] }
  0xee   :  { %1964 = vmatpush.bf16.msra.mxu0 %v2641_v2  ;;  %v3542_v2 = vld [vmem:[#allocation10 + $0x3c4] sm:$0xf] }
  0xef   :  { %1977 = vmatpush.bf16.msra.mxu1 %v2865_v3  ;;  %v2974_v3 = vld [vmem:[#allocation10 + $0x3dc] sm:$0xf0] }
  0xf0   :  { %v2977_v13 = vor.u32 %v3542_v2, %v2974_v3  ;;  %v2589_v2 = vor.u32 %v3448_v55, %v2588_v54  ;;  %v2952_v54 = vld [vmem:[#allocation10 + $0x390] sm:$0xf]  ;;  %v3539_v55 = vld [vmem:[#allocation10 + $0x3a8] sm:$0xf0] }
  0xf1   :  { %1989 = vmatpush.bf16.msra.mxu2 %v3117_v8  ;;  %2002 = vmatpush.bf16.msra.mxu3 %v3341_v9  ;;  %v2701_v8 = vor.u32 %v3476_v59, %v2700_v58  ;;  %v2925_v9 = vor.u32 %v3532_v1, %v2924_v0  ;;  %v2812_v58 = vld [vmem:[#allocation10 + $0x278] sm:$0xf]  ;;  %v3504_v59 = vld [vmem:[#allocation10 + $0x290] sm:$0xf0]  ;;  %v3288_v0 = vld [vmem:[#allocation10 + $0x630] sm:$0xf] }
  0xf2   :  { %1965 = vmatpush.bf16.msra.mxu0 %v2613_v14  ;;  %v3201_v14 = vor.u32 %v3598_v4, %v3198_v5  ;;  %v3623_v1 = vld [vmem:[#allocation10 + $0x648] sm:$0xf0]  ;;  %v2813_v3 = vor.u32 %v3504_v59, %v2812_v58  ;;  %v2560_v4 = vld [vmem:[#allocation10 + $0x80] sm:$0xf]  ;;  %v3441_v5 = vld [vmem:[#allocation10 + $0x98] sm:$0xf0] }
  0xf3   :  { %1978 = vmatpush.bf16.msra.mxu1 %v2837_v16  ;;  %v3525_v16 = vld [vmem:[#allocation10 + $0x338] sm:$0xf0]  ;;  %v3150_v59 = vld [vmem:[#allocation10 + $0x534] sm:$0xf0] }
  0xf4   :  { %v2897_v27 = vor.u32 %v3525_v16, %v2896_v12  ;;  %v3260_v12 = vld [vmem:[#allocation10 + $0x5f8] sm:$0xf]  ;;  %v3585_v58 = vld [vmem:[#allocation10 + $0x51c] sm:$0xf] }
  0xf5   :  { %1990 = vmatpush.bf16.msra.mxu2 %v3089_v20  ;;  %2003 = vmatpush.bf16.msra.mxu3 %v3313_v21  ;;  %v3148_v20 = vld [vmem:[#allocation10 + $0x518] sm:$0xf]  ;;  %v3588_v21 = vld [vmem:[#allocation10 + $0x530] sm:$0xf0] }
  0xf6   :  { %1966 = vmatpush.bf16.msra.mxu0 %v2585_v28  ;;  %v2949_v28 = vor.u32 %v3535_v17, %v2946_v18  ;;  %v3149_v32 = vor.u32 %v3588_v21, %v3148_v20  ;;  %v2532_v17 = vld [vmem:[#allocation10 + $0x48] sm:$0xf]  ;;  %v3434_v18 = vld [vmem:[#allocation10 + $0x60] sm:$0xf0] }
  0xf7   :  { %1979 = vmatpush.bf16.msra.mxu1 %v2809_v29  ;;  %v3173_v29 = vor.u32 %v3591_v15, %v3170_v19  ;;  %v3037_v15 = vor.u32 %v3560_v11, %v3036_v10  ;;  %v2756_v20 = vld [vmem:[#allocation10 + $0x208] sm:$0xf]  ;;  %v3490_v21 = vld [vmem:[#allocation10 + $0x220] sm:$0xf0]  ;;  %v3122_v11 = vld [vmem:[#allocation10 + $0x4fc] sm:$0xf0] }
  0xf8   :  { %v3578_v10 = vld [vmem:[#allocation10 + $0x4e4] sm:$0xf] }
  0xf9   :  { %1991 = vmatpush.bf16.msra.mxu2 %v3061_v34  ;;  %2004 = vmatpush.bf16.msra.mxu3 %v3285_v35  ;;  %v2868_v34 = vld [vmem:[#allocation10 + $0x2e8] sm:$0xf]  ;;  %v3518_v35 = vld [vmem:[#allocation10 + $0x300] sm:$0xf0] }
  0xfa   :  { %1967 = vmatpush.bf16.msra.mxu0 %v2557_v40  ;;  %v2645_v40 = vor.u32 %v3462_v31, %v2644_v30  ;;  %v2504_v30 = vld [vmem:[#allocation10 + $0x10] sm:$0xf]  ;;  %v3427_v31 = vld [vmem:[#allocation10 + $0x28] sm:$0xf0] }
  0xfb   :  { %1980 = vmatpush.bf16.msra.mxu1 %v2781_v41  ;;  %v2869_v41 = vor.u32 %v3518_v35, %v2868_v34  ;;  %v3483_v35 = vld [vmem:[#allocation10 + $0x1e8] sm:$0xf0] }
  0xfd   :  { %1992 = vmatpush.bf16.msra.mxu2 %v3033_v46  ;;  %2005 = vmatpush.bf16.msra.mxu3 %v3257_v47  ;;  %v2840_v46 = vld [vmem:[#allocation10 + $0x2b0] sm:$0xf]  ;;  %v3511_v47 = vld [vmem:[#allocation10 + $0x2c8] sm:$0xf0] }
  0xfe   :  { %1968 = vmatpush.bf16.msra.mxu0 %v2529_v52  ;;  %v2617_v52 = vor.u32 %v3455_v43, %v2616_v42  ;;  %v3204_v42 = vld [vmem:[#allocation10 + $0x588] sm:$0xf]  ;;  %v3602_v43 = vld [vmem:[#allocation10 + $0x5a0] sm:$0xf0] }
  0xff   :  { %1981 = vmatpush.bf16.msra.mxu1 %v2753_v53  ;;  %v2841_v53 = vor.u32 %v3511_v47, %v2840_v46  ;;  %v2705_v46 = vor.u32 %v3473_v36, %v2702_v37  ;;  %v2929_v47 = vor.u32 %v3529_v38, %v2926_v39  ;;  %v3564_v36 = vld [vmem:[#allocation10 + $0x474] sm:$0xf]  ;;  %v3066_v37 = vld [vmem:[#allocation10 + $0x48c] sm:$0xf0] }
 0x100   :  { %v3620_v38 = vld [vmem:[#allocation10 + $0x634] sm:$0xf]  ;;  %v3290_v39 = vld [vmem:[#allocation10 + $0x64c] sm:$0xf0] }
 0x101   :  { %1993 = vmatpush.bf16.msra.mxu2 %v3005_v62  ;;  %2006 = vmatpush.bf16.msra.mxu3 %v3229_v63  ;;  %v3064_v62 = vld [vmem:[#allocation10 + $0x470] sm:$0xf]  ;;  %v3567_v63 = vld [vmem:[#allocation10 + $0x488] sm:$0xf0] }
 0x102   :  { %1969 = vmatpush.bf16.msra.mxu0 %v2501_v6  ;;  %v3065_v6 = vor.u32 %v3567_v63, %v3064_v62  ;;  %v3641_v62 = vld [vmem:[#allocation10 + $0x6dc] sm:$0xf]  ;;  %v3374_v63 = vld [vmem:[#allocation10 + $0x6f4] sm:$0xf0] }
 0x103   :  { %1982 = vmatpush.bf16.msra.mxu1 %v2725_v7  ;;  %v3289_v7 = vor.u32 %v3623_v1, %v3288_v0  ;;  %v2677_v0 = vor.u32 %v3466_v48, %v2674_v49  ;;  %v3557_v48 = vld [vmem:[#allocation10 + $0x43c] sm:$0xf]  ;;  %v3038_v49 = vld [vmem:[#allocation10 + $0x454] sm:$0xf0] }
 0x105   :  { %1994 = vmatpush.bf16.msra.mxu2 %v2977_v13  ;;  %2007 = vmatpush.bf16.msra.mxu3 %v3201_v14  ;;  %v3616_v13 = vld [vmem:[#allocation10 + $0x610] sm:$0xf0]  ;;  %v2561_v14 = vor.u32 %v3441_v5, %v2560_v4  ;;  %v3459_v4 = vld [vmem:[#allocation10 + $0x12c] sm:$0xf]  ;;  %v2646_v5 = vld [vmem:[#allocation10 + $0x144] sm:$0xf0] }
 0x106   :  { %2014 = vmatpush.bf16.msrb.mxu0 %v2701_v8  ;;  %1983 = vmatmul.bf16.vlgmr.msra.gmra.mxu1 %v3925_v61  ;;  %v2784_v8 = vld [vmem:[#allocation10 + $0x240] sm:$0xf]  ;;  %v3261_v19 = vor.u32 %v3616_v13, %v3260_v12  ;;  %v3634_v12 = vld [vmem:[#allocation10 + $0x6a4] sm:$0xf] }
 0x107   :  { %2027 = vmatpush.bf16.msrb.mxu1 %v2925_v9  ;;  %1970 = vmatmul.bf16.vlgmr.msra.gmra.mxu0 %v3923_v60  ;;  %v3497_v9 = vld [vmem:[#allocation10 + $0x258] sm:$0xf0]  ;;  %v3346_v13 = vld [vmem:[#allocation10 + $0x6bc] sm:$0xf0] }
 0x108   :  { %v2785_v16 = vor.u32 %v3497_v9, %v2784_v8  ;;  %v3515_v8 = vld [vmem:[#allocation10 + $0x2ec] sm:$0xf]  ;;  %v2870_v9 = vld [vmem:[#allocation10 + $0x304] sm:$0xf0] }
 0x109   :  { %1995 = vmatpush.bf16.msra.mxu2 %v2949_v28  ;;  %2008 = vmatpush.bf16.msra.mxu3 %v3173_v29  ;;  %v2533_v28 = vor.u32 %v3434_v18, %v2532_v17  ;;  %v2757_v29 = vor.u32 %v3490_v21, %v2756_v20  ;;  %v3452_v17 = vld [vmem:[#allocation10 + $0xf4] sm:$0xf]  ;;  %v2618_v18 = vld [vmem:[#allocation10 + $0x10c] sm:$0xf0] }
 0x10a   :  { %2015 = vmatpush.bf16.msrb.mxu0 %v2673_v26  ;;  %v3232_v26 = vld [vmem:[#allocation10 + $0x5c0] sm:$0xf]  ;;  %v3508_v20 = vld [vmem:[#allocation10 + $0x2b4] sm:$0xf]  ;;  %v2842_v21 = vld [vmem:[#allocation10 + $0x2cc] sm:$0xf0] }
 0x10b   :  { %2028 = vmatpush.bf16.msrb.mxu1 %v2897_v27  ;;  %v3609_v27 = vld [vmem:[#allocation10 + $0x5d8] sm:$0xf0] }
 0x10c   :  { %1996 = vmatmul.bf16.vlgmr.msra.gmra.mxu2 %v3929_v23  ;;  %2009 = vmatmul.bf16.vlgmr.msra.gmra.mxu3 %v3931_v24  ;;  %v3233_v34 = vor.u32 %v3609_v27, %v3232_v26  ;;  %v3627_v26 = vld [vmem:[#allocation10 + $0x66c] sm:$0xf]  ;;  %v3318_v27 = vld [vmem:[#allocation10 + $0x684] sm:$0xf0] }
 0x10d   :  { %2040 = vmatpush.bf16.msrb.mxu2 %v3149_v32  ;;  %2053 = vmatpush.bf16.msrb.mxu3 %v3373_v33  ;;  %v2728_v32 = vld [vmem:[#allocation10 + $0x1d0] sm:$0xf]  ;;  %v3009_v33 = vor.u32 %v3553_v25, %v3008_v22  ;;  %v3571_v22 = vld [vmem:[#allocation10 + $0x4ac] sm:$0xf]  ;;  %v3094_v25 = vld [vmem:[#allocation10 + $0x4c4] sm:$0xf0] }
 0x10e   :  { %2016 = vmatpush.bf16.msrb.mxu0 %v2645_v40  ;;  %v2980_v40 = vld [vmem:[#allocation10 + $0x3c8] sm:$0xf] }
 0x10f   :  { %2029 = vmatpush.bf16.msrb.mxu1 %v2869_v41  ;;  %v3546_v41 = vld [vmem:[#allocation10 + $0x3e0] sm:$0xf0] }
 0x110   :  { %v2981_v51 = vor.u32 %v3546_v41, %v2980_v40 }
 0x111   :  { %2041 = vmatpush.bf16.msrb.mxu2 %v3121_v44  ;;  %2054 = vmatpush.bf16.msrb.mxu3 %v3345_v45  ;;  %v2505_v44 = vor.u32 %v3427_v31, %v2504_v30  ;;  %v2729_v45 = vor.u32 %v3483_v35, %v2728_v32  ;;  %v3445_v30 = vld [vmem:[#allocation10 + $0xbc] sm:$0xf]  ;;  %v2590_v31 = vld [vmem:[#allocation10 + $0xd4] sm:$0xf0]  ;;  %v3097_v32 = vor.u32 %v3571_v22, %v3094_v25  ;;  %v3470_v25 = vld [vmem:[#allocation10 + $0x180] sm:$0xf0] }
 0x112   :  { %2017 = vmatpush.bf16.msrb.mxu0 %v2617_v52  ;;  %v3205_v52 = vor.u32 %v3602_v43, %v3204_v42  ;;  %v2814_v35 = vld [vmem:[#allocation10 + $0x294] sm:$0xf0]  ;;  %v2593_v40 = vor.u32 %v3445_v30, %v2590_v31  ;;  %v3438_v42 = vld [vmem:[#allocation10 + $0x84] sm:$0xf]  ;;  %v2562_v43 = vld [vmem:[#allocation10 + $0x9c] sm:$0xf0] }
 0x113   :  { %2030 = vmatpush.bf16.msrb.mxu1 %v2841_v53  ;;  %v2898_v53 = vld [vmem:[#allocation10 + $0x33c] sm:$0xf0]  ;;  %v3536_v30 = vld [vmem:[#allocation10 + $0x394] sm:$0xf]  ;;  %v2954_v31 = vld [vmem:[#allocation10 + $0x3ac] sm:$0xf0] }
 0x114   :  { %v2901_v1 = vor.u32 %v3522_v50, %v2898_v53  ;;  %v3613_v50 = vld [vmem:[#allocation10 + $0x5fc] sm:$0xf] }
 0x115   :  { %2042 = vmatpush.bf16.msrb.mxu2 %v3093_v56  ;;  %2055 = vmatpush.bf16.msrb.mxu3 %v3317_v57  ;;  %v3176_v56 = vld [vmem:[#allocation10 + $0x550] sm:$0xf]  ;;  %v3595_v57 = vld [vmem:[#allocation10 + $0x568] sm:$0xf0] }
 0x116   :  { %2018 = vmatpush.bf16.msrb.mxu0 %v2589_v2  ;;  %v2953_v2 = vor.u32 %v3539_v55, %v2952_v54  ;;  %v3431_v54 = vld [vmem:[#allocation10 + $0x4c] sm:$0xf]  ;;  %v2534_v55 = vld [vmem:[#allocation10 + $0x64] sm:$0xf0] }
 0x117   :  { %2031 = vmatpush.bf16.msrb.mxu1 %v2813_v3  ;;  %v3177_v3 = vor.u32 %v3595_v57, %v3176_v56  ;;  %v3041_v56 = vor.u32 %v3557_v48, %v3038_v49  ;;  %v3519_v48 = vld [vmem:[#allocation10 + $0x308] sm:$0xf0] }
 0x119   :  { %2043 = vmatpush.bf16.msrb.mxu2 %v3065_v6  ;;  %2056 = vmatpush.bf16.msrb.mxu3 %v3289_v7  ;;  %v3153_v6 = vor.u32 %v3585_v58, %v3150_v59  ;;  %v3377_v7 = vor.u32 %v3641_v62, %v3374_v63  ;;  %v3487_v58 = vld [vmem:[#allocation10 + $0x20c] sm:$0xf]  ;;  %v2758_v59 = vld [vmem:[#allocation10 + $0x224] sm:$0xf0]  ;;  %v3550_v62 = vld [vmem:[#allocation10 + $0x404] sm:$0xf] }
 0x11a   :  { %2019 = vmatpush.bf16.msrb.mxu0 %v2561_v14  ;;  %v2649_v14 = vor.u32 %v3459_v4, %v2646_v5  ;;  %v3010_v63 = vld [vmem:[#allocation10 + $0x41c] sm:$0xf0]  ;;  %v3424_v4 = vld [vmem:[#allocation10 + $0x14] sm:$0xf]  ;;  %v2506_v5 = vld [vmem:[#allocation10 + $0x2c] sm:$0xf0] }
 0x11b   :  { %2032 = vmatpush.bf16.msrb.mxu1 %v2785_v16  ;;  %v2873_v16 = vor.u32 %v3515_v8, %v2870_v9  ;;  %v2730_v9 = vld [vmem:[#allocation10 + $0x1ec] sm:$0xf0] }
 0x11d   :  { %2044 = vmatpush.bf16.msrb.mxu2 %v3037_v15  ;;  %2057 = vmatpush.bf16.msrb.mxu3 %v3261_v19  ;;  %v3125_v15 = vor.u32 %v3578_v10, %v3122_v11  ;;  %v3349_v19 = vor.u32 %v3634_v12, %v3346_v13  ;;  %v2708_v10 = vld [vmem:[#allocation10 + $0x1a0] sm:$0xf]  ;;  %v3477_v11 = vld [vmem:[#allocation10 + $0x1b8] sm:$0xf0] }
 0x11e   :  { %2020 = vmatpush.bf16.msrb.mxu0 %v2533_v28  ;;  %v2621_v28 = vor.u32 %v3452_v17, %v2618_v18  ;;  %v2932_v12 = vld [vmem:[#allocation10 + $0x360] sm:$0xf]  ;;  %v3533_v13 = vld [vmem:[#allocation10 + $0x378] sm:$0xf0]  ;;  %v3599_v17 = vld [vmem:[#allocation10 + $0x58c] sm:$0xf] }
 0x11f   :  { %2033 = vmatpush.bf16.msrb.mxu1 %v2757_v29  ;;  %v2845_v29 = vor.u32 %v3508_v20, %v2842_v21  ;;  %v3206_v18 = vld [vmem:[#allocation10 + $0x5a4] sm:$0xf0]  ;;  %v2709_v21 = vor.u32 %v3477_v11, %v2708_v10  ;;  %v2933_v22 = vor.u32 %v3533_v13, %v2932_v12  ;;  %v2596_v10 = vld [vmem:[#allocation10 + $0xc0] sm:$0xf]  ;;  %v3449_v11 = vld [vmem:[#allocation10 + $0xd8] sm:$0xf0] }
 0x120   :  { %v2680_v20 = vld [vmem:[#allocation10 + $0x168] sm:$0xf] }
 0x121   :  { %2045 = vmatpush.bf16.msrb.mxu2 %v3009_v33  ;;  %2058 = vmatpush.bf16.msrb.mxu3 %v3233_v34  ;;  %v3321_v33 = vor.u32 %v3627_v26, %v3318_v27  ;;  %v3501_v34 = vld [vmem:[#allocation10 + $0x27c] sm:$0xf]  ;;  %v2904_v26 = vld [vmem:[#allocation10 + $0x328] sm:$0xf]  ;;  %v3526_v27 = vld [vmem:[#allocation10 + $0x340] sm:$0xf0] }
 0x122   :  { %2021 = vmatpush.bf16.msrb.mxu0 %v2505_v44  ;;  %v2817_v41 = vor.u32 %v3501_v34, %v2814_v35  ;;  %v3069_v44 = vor.u32 %v3564_v36, %v3066_v37  ;;  %v3156_v34 = vld [vmem:[#allocation10 + $0x520] sm:$0xf]  ;;  %v3589_v35 = vld [vmem:[#allocation10 + $0x538] sm:$0xf0] }
 0x123   :  { %2034 = vmatpush.bf16.msrb.mxu1 %v2729_v45  ;;  %v3293_v45 = vor.u32 %v3620_v38, %v3290_v39  ;;  %v3380_v36 = vld [vmem:[#allocation10 + $0x6e0] sm:$0xf]  ;;  %v3645_v37 = vld [vmem:[#allocation10 + $0x6f8] sm:$0xf0]  ;;  %v2681_v39 = vor.u32 %v3470_v25, %v2680_v20  ;;  %v2597_v20 = vor.u32 %v3449_v11, %v2596_v10 }
 0x124   :  { %v3951_v38 = vld [vmem:[#allocation12] sm:$0xff] }
 0x125   :  { %2046 = vmatpush.bf16.msrb.mxu2 %v2981_v51  ;;  %2059 = vmatpush.bf16.msrb.mxu3 %v3205_v52  ;;  %v3262_v51 = vld [vmem:[#allocation10 + $0x614] sm:$0xf0]  ;;  %v2565_v52 = vor.u32 %v3438_v42, %v2562_v43  ;;  %v2652_v43 = vld [vmem:[#allocation10 + $0x130] sm:$0xf]  ;;  %v1792_v49 = vperm.slane %v3951_v38, 0 }
 0x126   :  { %2066 = vmatpush.bf16.msra.mxu0 %v2705_v46  ;;  %2035 = vmatmul.bf16.vlgmr.msrb.gmra.mxu1 %v3925_v61  ;;  %v3494_v46 = vld [vmem:[#allocation10 + $0x244] sm:$0xf]  ;;  %v3265_v57 = vor.u32 %v3613_v50, %v3262_v51  ;;  %v3128_v50 = vld [vmem:[#allocation10 + $0x4e8] sm:$0xf] }
 0x127   :  { %2079 = vmatpush.bf16.msra.mxu1 %v2929_v47  ;;  %2022 = vmatmul.bf16.vlgmr.msrb.gmra.mxu0 %v3923_v60  ;;  %v2786_v47 = vld [vmem:[#allocation10 + $0x25c] sm:$0xf0]  ;;  %v3582_v51 = vld [vmem:[#allocation10 + $0x500] sm:$0xf0] }
 0x128   :  { %v2789_v53 = vor.u32 %v3494_v46, %v2786_v47  ;;  %v3157_v46 = vor.u32 %v3589_v35, %v3156_v34  ;;  %v3381_v47 = vor.u32 %v3645_v37, %v3380_v36  ;;  %v3268_v34 = vld [vmem:[#allocation10 + $0x600] sm:$0xf]  ;;  %v3617_v35 = vld [vmem:[#allocation10 + $0x618] sm:$0xf0] }
 0x129   :  { %2047 = vmatpush.bf16.msrb.mxu2 %v2953_v2  ;;  %2060 = vmatpush.bf16.msrb.mxu3 %v3177_v3  ;;  %v2537_v2 = vor.u32 %v3431_v54, %v2534_v55  ;;  %v2761_v3 = vor.u32 %v3487_v58, %v2758_v59  ;;  %v2624_v58 = vld [vmem:[#allocation10 + $0xf8] sm:$0xf]  ;;  %v3456_v59 = vld [vmem:[#allocation10 + $0x110] sm:$0xf0] }
 0x12a   :  { %2067 = vmatpush.bf16.msra.mxu0 %v2677_v0  ;;  %v3606_v0 = vld [vmem:[#allocation10 + $0x5c4] sm:$0xf] }
 0x12b   :  { %2080 = vmatpush.bf16.msra.mxu1 %v2901_v1  ;;  %v3234_v1 = vld [vmem:[#allocation10 + $0x5dc] sm:$0xf0] }
 0x12c   :  { %2048 = vmatmul.bf16.vlgmr.msrb.gmra.mxu2 %v3929_v23  ;;  %2061 = vmatmul.bf16.vlgmr.msrb.gmra.mxu3 %v3931_v24  ;;  %v3237_v8 = vor.u32 %v3606_v0, %v3234_v1  ;;  %v2848_v1 = vld [vmem:[#allocation10 + $0x2b8] sm:$0xf] }
 0x12d   :  { %2092 = vmatpush.bf16.msra.mxu2 %v3153_v6  ;;  %2105 = vmatpush.bf16.msra.mxu3 %v3377_v7  ;;  %v3480_v6 = vld [vmem:[#allocation10 + $0x1d4] sm:$0xf]  ;;  %v3013_v7 = vor.u32 %v3550_v62, %v3010_v63  ;;  %v3129_v63 = vor.u32 %v3582_v51, %v3128_v50  ;;  %v1793_v50 = vperm.slane %v3951_v38, 1  ;;  %v3240_v51 = vld [vmem:[#allocation10 + $0x5c8] sm:$0xf] }
 0x12e   :  { %2068 = vmatpush.bf16.msra.mxu0 %v2649_v14  ;;  %v3543_v14 = vld [vmem:[#allocation10 + $0x3cc] sm:$0xf] }
 0x12f   :  { %2081 = vmatpush.bf16.msra.mxu1 %v2873_v16  ;;  %v2982_v16 = vld [vmem:[#allocation10 + $0x3e4] sm:$0xf0] }
 0x131   :  { %2093 = vmatpush.bf16.msra.mxu2 %v3125_v15  ;;  %2106 = vmatpush.bf16.msra.mxu3 %v3349_v19  ;;  %v2509_v15 = vor.u32 %v3424_v4, %v2506_v5  ;;  %v2733_v19 = vor.u32 %v3480_v6, %v2730_v9  ;;  %v3575_v4 = vld [vmem:[#allocation10 + $0x4c8] sm:$0xf0]  ;;  %v3324_v5 = vld [vmem:[#allocation10 + $0x670] sm:$0xf] }
 0x132   :  { %2069 = vmatpush.bf16.msra.mxu0 %v2621_v28  ;;  %v2985_v28 = vor.u32 %v3543_v14, %v2982_v16  ;;  %v3631_v6 = vld [vmem:[#allocation10 + $0x688] sm:$0xf0]  ;;  %v2820_v14 = vld [vmem:[#allocation10 + $0x280] sm:$0xf]  ;;  %v3505_v16 = vld [vmem:[#allocation10 + $0x298] sm:$0xf0] }
 0x133   :  { %2082 = vmatpush.bf16.msra.mxu1 %v2845_v29  ;;  %v3209_v29 = vor.u32 %v3599_v17, %v3206_v18  ;;  %v3325_v13 = vor.u32 %v3631_v6, %v3324_v5  ;;  %v3072_v17 = vld [vmem:[#allocation10 + $0x478] sm:$0xf]  ;;  %v3568_v18 = vld [vmem:[#allocation10 + $0x490] sm:$0xf0]  ;;  %v3212_v6 = vld [vmem:[#allocation10 + $0x590] sm:$0xf] }
 0x135   :  { %2094 = vmatpush.bf16.msra.mxu2 %v3097_v32  ;;  %2107 = vmatpush.bf16.msra.mxu3 %v3321_v33  ;;  %v3592_v32 = vld [vmem:[#allocation10 + $0x554] sm:$0xf]  ;;  %v3178_v33 = vld [vmem:[#allocation10 + $0x56c] sm:$0xf0] }
 0x136   :  { %2070 = vmatpush.bf16.msra.mxu0 %v2593_v40  ;;  %v2905_v40 = vor.u32 %v3526_v27, %v2904_v26  ;;  %v3181_v42 = vor.u32 %v3592_v32, %v3178_v33  ;;  %v2568_v26 = vld [vmem:[#allocation10 + $0x88] sm:$0xf]  ;;  %v3442_v27 = vld [vmem:[#allocation10 + $0xa0] sm:$0xf0]  ;;  %v3044_v32 = vld [vmem:[#allocation10 + $0x440] sm:$0xf] }
 0x137   :  { %2083 = vmatpush.bf16.msra.mxu1 %v2817_v41  ;;  %v2957_v41 = vor.u32 %v3536_v30, %v2954_v31  ;;  %v2792_v30 = vld [vmem:[#allocation10 + $0x248] sm:$0xf]  ;;  %v3498_v31 = vld [vmem:[#allocation10 + $0x260] sm:$0xf0]  ;;  %v3561_v33 = vld [vmem:[#allocation10 + $0x458] sm:$0xf0]  ;;  %v2569_v36 = vor.u32 %v3442_v27, %v2568_v26 }
 0x138   :  { %v2793_v37 = vor.u32 %v3498_v31, %v2792_v30 }
 0x139   :  { %2095 = vmatpush.bf16.msra.mxu2 %v3069_v44  ;;  %2108 = vmatpush.bf16.msra.mxu3 %v3293_v45  ;;  %v3463_v44 = vld [vmem:[#allocation10 + $0x148] sm:$0xf0]  ;;  %v2876_v45 = vld [vmem:[#allocation10 + $0x2f0] sm:$0xf] }
 0x13a   :  { %2071 = vmatpush.bf16.msra.mxu0 %v2565_v52  ;;  %v3352_v52 = vld [vmem:[#allocation10 + $0x6a8] sm:$0xf]  ;;  %v2653_v54 = vor.u32 %v3463_v44, %v2652_v43  ;;  %v2877_v55 = vor.u32 %v3519_v48, %v2876_v45  ;;  %v3045_v44 = vor.u32 %v3561_v33, %v3044_v32  ;;  %v3269_v45 = vor.u32 %v3617_v35, %v3268_v34  ;;  %v3554_v48 = vld [vmem:[#allocation10 + $0x420] sm:$0xf0] }
 0x13b   :  { %2084 = vmatpush.bf16.msra.mxu1 %v2789_v53  ;;  %v3638_v53 = vld [vmem:[#allocation10 + $0x6c0] sm:$0xf0] }
 0x13c   :  { %v3353_v0 = vor.u32 %v3638_v53, %v3352_v52  ;;  %v3610_v52 = vld [vmem:[#allocation10 + $0x5e0] sm:$0xf0] }
 0x13d   :  { %2096 = vmatpush.bf16.msra.mxu2 %v3041_v56  ;;  %2109 = vmatpush.bf16.msra.mxu3 %v3265_v57 }
 0x13e   :  { %2072 = vmatpush.bf16.msra.mxu0 %v2537_v2  ;;  %v3512_v2 = vld [vmem:[#allocation10 + $0x2d0] sm:$0xf0] }
 0x13f   :  { %2085 = vmatpush.bf16.msra.mxu1 %v2761_v3  ;;  %v3100_v3 = vld [vmem:[#allocation10 + $0x4b0] sm:$0xf]  ;;  %v2849_v9 = vor.u32 %v3512_v2, %v2848_v1  ;;  %v3484_v1 = vld [vmem:[#allocation10 + $0x1f0] sm:$0xf0] }
 0x140   :  { %v3101_v12 = vor.u32 %v3575_v4, %v3100_v3  ;;  %v2988_v2 = vld [vmem:[#allocation10 + $0x3d0] sm:$0xf]  ;;  %v3547_v3 = vld [vmem:[#allocation10 + $0x3e8] sm:$0xf0] }
 0x141   :  { %2097 = vmatpush.bf16.msra.mxu2 %v3013_v7  ;;  %2110 = vmatpush.bf16.msra.mxu3 %v3237_v8  ;;  %v1815_v56 = vpop.f32.mrf.mxu0  ;;  %v2625_v8 = vor.u32 %v3456_v59, %v2624_v58  ;;  %v2736_v58 = vld [vmem:[#allocation10 + $0x1d8] sm:$0xf] }
 0x142   :  { %2073 = vmatpush.bf16.msra.mxu0 %v2509_v15  ;;  %v1828_v57 = vpop.f32.mrf.mxu1  ;;  %v1816_v62 = vadd.f32 %v1815_v56, %v1792_v49  ;;  %v3296_v15 = vld [vmem:[#allocation10 + $0x638] sm:$0xf]  ;;  %v2737_v10 = vor.u32 %v3484_v1, %v2736_v58 }
 0x143   :  { %2086 = vmatpush.bf16.msra.mxu1 %v2733_v19  ;;  %v3624_v19 = vld [vmem:[#allocation10 + $0x650] sm:$0xf0]  ;;  %v2512_v56 = vld [vmem:[#allocation10 + $0x18] sm:$0xf] }
 0x144   :  { %v1829_v7 = vadd.f32 %v1828_v57, %v1816_v62  ;;  %v3428_v57 = vld [vmem:[#allocation10 + $0x30] sm:$0xf0] }
 0x145   :  { %2098 = vmatpush.bf16.msra.mxu2 %v2985_v28  ;;  %2111 = vmatpush.bf16.msra.mxu3 %v3209_v29  ;;  %v3073_v28 = vor.u32 %v3568_v18, %v3072_v17  ;;  %v3297_v29 = vor.u32 %v3624_v19, %v3296_v15  ;;  %v3540_v17 = vld [vmem:[#allocation10 + $0x3b0] sm:$0xf0]  ;;  %v3184_v18 = vld [vmem:[#allocation10 + $0x558] sm:$0xf] }
 0x146   :  { %2118 = vmatpush.bf16.msrb.mxu0 %v2709_v21  ;;  %2087 = vmatmul.bf16.vlgmr.msra.gmra.mxu1 %v3925_v61  ;;  %v2821_v21 = vor.u32 %v3505_v16, %v2820_v14  ;;  %v2960_v16 = vld [vmem:[#allocation10 + $0x398] sm:$0xf]  ;;  %v3596_v15 = vld [vmem:[#allocation10 + $0x570] sm:$0xf0] }
 0x147   :  { %2131 = vmatpush.bf16.msrb.mxu1 %v2933_v22  ;;  %2074 = vmatmul.bf16.vlgmr.msra.gmra.mxu0 %v3923_v60 }
 0x149   :  { %2099 = vmatpush.bf16.msra.mxu2 %v2957_v41  ;;  %2112 = vmatpush.bf16.msra.mxu3 %v3181_v42  ;;  %v1817_v22 = vpop.f32.mrf.mxu0  ;;  %v2764_v41 = vld [vmem:[#allocation10 + $0x210] sm:$0xf] }
 0x14a   :  { %2119 = vmatpush.bf16.msrb.mxu0 %v2681_v39  ;;  %v1830_v25 = vpop.f32.mrf.mxu1  ;;  %v2540_v39 = vld [vmem:[#allocation10 + $0x50] sm:$0xf]  ;;  %v3185_v22 = vor.u32 %v3596_v15, %v3184_v18 }
 0x14b   :  { %2132 = vmatpush.bf16.msrb.mxu1 %v2905_v40  ;;  %v3435_v40 = vld [vmem:[#allocation10 + $0x68] sm:$0xf0] }
 0x14c   :  { %2100 = vmatmul.bf16.vlgmr.msra.gmra.mxu2 %v3929_v23  ;;  %2113 = vmatmul.bf16.vlgmr.msra.gmra.mxu3 %v3931_v24 }
 0x14d   :  { %2144 = vmatpush.bf16.msrb.mxu2 %v3157_v46  ;;  %2157 = vmatpush.bf16.msrb.mxu3 %v3381_v47  ;;  %v3491_v46 = vld [vmem:[#allocation10 + $0x228] sm:$0xf0]  ;;  %v3016_v47 = vld [vmem:[#allocation10 + $0x408] sm:$0xf] }
 0x14e   :  { %2120 = vmatpush.bf16.msrb.mxu0 %v2653_v54  ;;  %v2541_v54 = vor.u32 %v3435_v40, %v2540_v39 }
 0x14f   :  { %2133 = vmatpush.bf16.msrb.mxu1 %v2877_v55  ;;  %v1841_v42 = vpop.f32.mrf.mxu2  ;;  %v1854_v43 = vpop.f32.mrf.mxu3  ;;  %v2765_v55 = vor.u32 %v3491_v46, %v2764_v41 }
 0x150   :  { %v1842_v49 = vadd.f32 %v1841_v42, %v1829_v7  ;;  %v3603_v7 = vld [vmem:[#allocation10 + $0x5a8] sm:$0xf0] }
 0x151   :  { %2145 = vmatpush.bf16.msrb.mxu2 %v3129_v63  ;;  %2158 = vmatpush.bf16.msrb.mxu3 %v3353_v0  ;;  %v1867_v59 = vpop.f32.mrf.mxu0  ;;  %v3017_v63 = vor.u32 %v3554_v48, %v3016_v47  ;;  %v3241_v0 = vor.u32 %v3610_v52, %v3240_v51  ;;  %v3213_v14 = vor.u32 %v3603_v7, %v3212_v6 }
 0x152   :  { %2121 = vmatpush.bf16.msrb.mxu0 %v2625_v8  ;;  %v1855_v53 = vadd.f32 %v1854_v43, %v1842_v49  ;;  %v1868_v5 = vadd.f32 %v1867_v59, %v1793_v50 }
 0x153   :  { %2134 = vmatpush.bf16.msrb.mxu1 %v2849_v9  ;;  %v1880_v62 = vpop.f32.mrf.mxu1  ;;  %v2513_v9 = vor.u32 %v3428_v57, %v2512_v56 }
 0x154   :  { %v3382_v4 = vmul.f32 -1.442695, %v1855_v53  ;;  %v1881_v8 = vadd.f32 %v1880_v62, %v1868_v5 }
 0x155   :  { %2146 = vmatpush.bf16.msrb.mxu2 %v3101_v12  ;;  %2159 = vmatpush.bf16.msrb.mxu3 %v3325_v13  ;;  %v2989_v13 = vor.u32 %v3547_v3, %v2988_v2 }
 0x156   :  { %2122 = vmatpush.bf16.msrb.mxu0 %v2597_v20  ;;  %3658 = vpow2.f32 %v3382_v4 }
 0x157   :  { %2135 = vmatpush.bf16.msrb.mxu1 %v2821_v21  ;;  %v1843_v11 = vpop.f32.mrf.mxu2  ;;  %v1856_v12 = vpop.f32.mrf.mxu3  ;;  %v2961_v21 = vor.u32 %v3540_v17, %v2960_v16 }
 0x159   :  { %2147 = vmatpush.bf16.msrb.mxu2 %v3073_v28  ;;  %2160 = vmatpush.bf16.msrb.mxu3 %v3297_v29  ;;  %v1869_v19 = vpop.f32.mrf.mxu0  ;;  %v1794_v29 = vperm.slane %v3951_v38, 2 }
 0x15a   :  { %2123 = vmatpush.bf16.msrb.mxu0 %v2569_v36 }
 0x15b   :  { %2136 = vmatpush.bf16.msrb.mxu1 %v2793_v37  ;;  %v1882_v20 = vpop.f32.mrf.mxu1 }
 0x15c   :  { %v3659_v25 = vpop.eup %3658 }
 0x15d   :  { %2148 = vmatpush.bf16.msrb.mxu2 %v3045_v44  ;;  %2161 = vmatpush.bf16.msrb.mxu3 %v3269_v45  ;;  %v2191_v30 = vadd.f32 1.0, %v3659_v25 }
 0x15e   :  { %2124 = vmatpush.bf16.msrb.mxu0 %v2541_v54 }
 0x15f   :  { %2137 = vmatpush.bf16.msrb.mxu1 %v2765_v55  ;;  %v1893_v26 = vpop.f32.mrf.mxu2  ;;  %v1906_v27 = vpop.f32.mrf.mxu3  ;;  %3660 = vrcp.f32 %v2191_v30  ;;  %vm2203_vm2 = vweird.f32 %v2191_v30  ;;  %v2209_v57 = vand.u32 2147483648, %v2191_v30 }
 0x160   :  { %v1894_v28 = vadd.f32 %v1893_v26, %v1881_v8 }
 0x161   :  { %2149 = vmatpush.bf16.msrb.mxu2 %v3017_v63  ;;  %2162 = vmatpush.bf16.msrb.mxu3 %v3241_v0  ;;  %v1795_v63 = vperm.slane %v3951_v38, 3  ;;  %v2207_v0 = vand.u32 2147483647, %v2191_v30  ;;  %v2210_v4 = vor.u32 1.1754944e-38, %v2209_v57 }
 0x162   :  { %2125 = vmatpush.bf16.msrb.mxu0 %v2513_v9  ;;  %v1907_v31 = vadd.f32 %v1906_v27, %v1894_v28 }
 0x163   :  { %2138 = vmatpush.bf16.msrb.mxu1 %v2737_v10  ;;  %v1932_v33 = vpop.f32.mrf.mxu1  ;;  %vm2208_vm8 = vcmp.eq.f32.partialorder %v2207_v0, 8.507059e+37  ;;  %v1797_v0 = vperm.slane %v3951_v38, 5 }
 0x164   :  { %v1919_v32 = vpop.f32.mrf.mxu0  ;;  %v3383_v34 = vmul.f32 -1.442695, %v1907_v31 }
 0x165   :  { %2150 = vmatpush.bf16.msrb.mxu2 %v2989_v13  ;;  %2163 = vmatpush.bf16.msrb.mxu3 %v3213_v14  ;;  %v3661_v37 = vpop.eup %3660 }
 0x166   :  { %2126 = vmatmul.bf16.vlgmr.msrb.gmra.mxu0 %v3923_v60  ;;  %2139 = vmatmul.bf16.vlgmr.msrb.gmra.mxu1 %v3925_v61  ;;  %v1920_v60 = vadd.f32 %v1919_v32, %v1794_v29  ;;  %3662 = vpow2.f32 %v3383_v34  ;;  %v2199_v43 = vmul.f32 %v3661_v37, %v2191_v30  ;;  %vm2204_vm1 = vweird.f32 %v3661_v37 }
 0x167   :  { %v1895_v35 = vpop.f32.mrf.mxu2  ;;  %v1908_v36 = vpop.f32.mrf.mxu3  ;;  %vm2205_vm5 = vmor %vm2203_vm2, %vm2204_vm1  ;;  %v1796_v30 = vperm.slane %v3951_v38, 4  ;;  %vm2318_vm1 = vcmask 1042434   ;;  %vm2320_vm2 = vcmask 1041408  }
 0x168   :  { %v1933_v61 = vadd.f32 %v1932_v33, %v1920_v60 }
 0x169   :  { %2151 = vmatpush.bf16.msrb.mxu2 %v2961_v21  ;;  %2164 = vmatpush.bf16.msrb.mxu3 %v3185_v22 }
 0x16b   :  { %v1934_v40 = vpop.f32.mrf.mxu1 }
 0x16c   :  { %2152 = vmatmul.bf16.vlgmr.msrb.gmra.mxu2 %v3929_v23  ;;  %2165 = vmatmul.bf16.vlgmr.msrb.gmra.mxu3 %v3931_v24  ;;  %v1921_v39 = vpop.f32.mrf.mxu0  ;;  %v3663_v41 = vpop.eup %3662  ;;  %v2200_v24 = vsub.f32 1.0, %v2199_v43 }
 0x16d   :  { %v2192_v42 = vadd.f32 1.0, %v3663_v41 }
 0x16e   :  { %v2201_v49 = vmul.f32 %v3661_v37, %v2200_v24 }
 0x16f   :  { %3664 = vrcp.f32 %v2192_v42  ;;  %v1945_v44 = vpop.f32.mrf.mxu2  ;;  %v1958_v23 = vpop.f32.mrf.mxu3  ;;  %v2224_v53 = vand.u32 2147483648, %v2192_v42  ;;  %v2222_v55 = vand.u32 2147483647, %v2192_v42  ;;  %vm2218_vm3 = vweird.f32 %v2192_v42 }
 0x170   :  { %v1946_v45 = vadd.f32 %v1945_v44, %v1933_v61  ;;  %v2202_v56 = vadd.f32 %v3661_v37, %v2201_v49 }
 0x171   :  { %v2225_v59 = vor.u32 1.1754944e-38, %v2224_v53  ;;  %vm2223_vm6 = vcmp.eq.f32.partialorder %v2222_v55, 8.507059e+37 }
 0x172   :  { %v1959_v46 = vadd.f32 %v1958_v23, %v1946_v45  ;;  %v2206_v2 = vsel %vm2205_vm5, %v3661_v37, %v2202_v56 }
 0x173   :  { %v2211_v9 = vsel %vm2208_vm8, %v2210_v4, %v2206_v2 }
 0x174   :  { %v3384_v62 = vmul.f32 -1.442695, %v1959_v46 }
 0x175   :  { %v3665_v47 = vpop.eup %3664 }
 0x176   :  { %v2214_v48 = vmul.f32 %v3665_v47, %v2192_v42  ;;  %vm2219_vm0 = vweird.f32 %v3665_v47  ;;  %3666 = vpow2.f32 %v3384_v62 }
 0x177   :  { %v1947_v51 = vpop.f32.mrf.mxu2  ;;  %v1960_v52 = vpop.f32.mrf.mxu3  ;;  %vm2220_vm4 = vmor %vm2218_vm3, %vm2219_vm0 }
 0x178   :  { %v2215_v50 = vsub.f32 1.0, %v2214_v48 }
 0x17a   :  { %v2216_v54 = vmul.f32 %v3665_v47, %v2215_v50 }
 0x17c   :  { %v2217_v58 = vadd.f32 %v3665_v47, %v2216_v54  ;;  %v3667_v12 = vpop.eup %3666 }
 0x17d   :  { %v2193_v16 = vadd.f32 1.0, %v3667_v12 }
 0x17e   :  { %v2221_v1 = vsel %vm2220_vm4, %v3665_v47, %v2217_v58 }
 0x17f   :  { %v2226_v3 = vsel %vm2223_vm6, %v2225_v59, %v2221_v1  ;;  %3668 = vrcp.f32 %v2193_v16  ;;  %v2239_v37 = vand.u32 2147483648, %v2193_v16  ;;  %vm2233_vm10 = vweird.f32 %v2193_v16 }
 0x180   :  { %v2310_v8 = vrot.slane %v2226_v3, 7  ;;  %v2237_v39 = vand.u32 2147483647, %v2193_v16 }
 0x181   :  { %v2240_v46 = vor.u32 1.1754944e-38, %v2239_v37 }
 0x182   :  { %v2317_v11 = vsel %vm2316_vm7, %v2211_v9, %v2310_v8  ;;  %vm2238_vm13 = vcmp.eq.f32.partialorder %v2237_v39, 8.507059e+37 }
 0x183   :  { %v1984_v6 = vpop.f32.mrf.mxu1 }
 0x184   :  { %v1971_v5 = vpop.f32.mrf.mxu0 }
 0x185   :  { %v1972_v7 = vadd.f32 %v1971_v5, %v1795_v63  ;;  %v3669_v21 = vpop.eup %3668 }
 0x186   :  { %v2229_v26 = vmul.f32 %v3669_v21, %v2193_v16  ;;  %vm2234_vm9 = vweird.f32 %v3669_v21 }
 0x187   :  { %v1985_v10 = vadd.f32 %v1984_v6, %v1972_v7  ;;  %vm3966_vm11 = vmor %vm2233_vm10, %vm2234_vm9 }
 0x188   :  { %v2230_v29 = vsub.f32 1.0, %v2229_v26 }
 0x18a   :  { %v2231_v33 = vmul.f32 %v3669_v21, %v2230_v29 }
 0x18b   :  { %v1986_v14 = vpop.f32.mrf.mxu1 }
 0x18c   :  { %v1973_v13 = vpop.f32.mrf.mxu0  ;;  %v2232_v35 = vadd.f32 %v3669_v21, %v2231_v33 }
 0x18e   :  { %v2236_v24 = vsel %vm3966_vm11, %v3669_v21, %v2232_v35 }
 0x18f   :  { %v1997_v17 = vpop.f32.mrf.mxu2  ;;  %v2010_v18 = vpop.f32.mrf.mxu3  ;;  %v2241_v51 = vsel %vm2238_vm13, %v2240_v46, %v2236_v24 }
 0x190   :  { %v1998_v15 = vadd.f32 %v1997_v17, %v1985_v10  ;;  %v2311_v54 = vrot.slane %v2241_v51, 6 }
 0x192   :  { %v2011_v19 = vadd.f32 %v2010_v18, %v1998_v15  ;;  %v1798_v18 = vperm.slane %v3951_v38, 6 }
 0x194   :  { %v3385_v20 = vmul.f32 -1.442695, %v2011_v19 }
 0x196   :  { %3670 = vpow2.f32 %v3385_v20 }
 0x197   :  { %v1999_v22 = vpop.f32.mrf.mxu2  ;;  %v2012_v25 = vpop.f32.mrf.mxu3 }
 0x19c   :  { %v3671_v27 = vpop.eup %3670 }
 0x19d   :  { %v2194_v28 = vadd.f32 1.0, %v3671_v27 }
 0x19f   :  { %3672 = vrcp.f32 %v2194_v28  ;;  %v2254_v42 = vand.u32 2147483648, %v2194_v28  ;;  %v2252_v45 = vand.u32 2147483647, %v2194_v28  ;;  %vm2248_vm14 = vweird.f32 %v2194_v28 }
 0x1a1   :  { %v2255_v48 = vor.u32 1.1754944e-38, %v2254_v42  ;;  %vm2253_vm0 = vcmp.eq.f32.partialorder %v2252_v45, 8.507059e+37 }
 0x1a3   :  { %v2036_v32 = vpop.f32.mrf.mxu1 }
 0x1a4   :  { %v2023_v31 = vpop.f32.mrf.mxu0 }
 0x1a5   :  { %v2024_v34 = vadd.f32 %v2023_v31, %v1796_v30  ;;  %v3673_v61 = vpop.eup %3672 }
 0x1a6   :  { %v2244_v36 = vmul.f32 %v3673_v61, %v2194_v28  ;;  %vm2249_vm12 = vweird.f32 %v3673_v61 }
 0x1a7   :  { %v2037_v60 = vadd.f32 %v2036_v32, %v2024_v34  ;;  %vm2250_vm15 = vmor %vm2248_vm14, %vm2249_vm12 }
 0x1a8   :  { %v2245_v40 = vsub.f32 1.0, %v2244_v36 }
 0x1aa   :  { %v2246_v23 = vmul.f32 %v3673_v61, %v2245_v40 }
 0x1ab   :  { %v2038_v44 = vpop.f32.mrf.mxu1 }
 0x1ac   :  { %v2025_v43 = vpop.f32.mrf.mxu0  ;;  %v2247_v47 = vadd.f32 %v3673_v61, %v2246_v23 }
 0x1ae   :  { %v2251_v52 = vsel %vm2250_vm15, %v3673_v61, %v2247_v47  ;;  %vm2322_vm15 = vcmask 1044484  }
 0x1af   :  { %v2049_v49 = vpop.f32.mrf.mxu2  ;;  %v2062_v50 = vpop.f32.mrf.mxu3  ;;  %v2256_v53 = vsel %vm2253_vm0, %v2255_v48, %v2251_v52  ;;  %vm2324_vm0 = vcmask 1045508  }
 0x1b0   :  { %v2312_v55 = vrot.slane %v2256_v53, 5  ;;  %v2050_v8 = vadd.f32 %v2049_v49, %v2037_v60 }
 0x1b2   :  { %v2319_v56 = vsel %vm2318_vm1, %v2311_v54, %v2312_v55  ;;  %v2063_v13 = vadd.f32 %v2062_v50, %v2050_v8  ;;  %vm2326_vm1 = vcmask 1043456  }
 0x1b3   :  { %v3972_v57 = vsel %vm2320_vm2, %v2317_v11, %v2319_v56 }
 0x1b4   :  { %v3386_v14 = vmul.f32 -1.442695, %v2063_v13 }
 0x1b7   :  { %v2051_v58 = vpop.f32.mrf.mxu2  ;;  %v2064_v59 = vpop.f32.mrf.mxu3 }
 0x1c3   :  { %v2088_v63 = vpop.f32.mrf.mxu1 }
 0x1c4   :  { %v2075_v62 = vpop.f32.mrf.mxu0 }
 0x1c5   :  { %v2076_v3 = vadd.f32 %v2075_v62, %v1797_v0 }
 0x1c7   :  { %v2089_v6 = vadd.f32 %v2088_v63, %v2076_v3 }
 0x1cb   :  { %v2090_v2 = vpop.f32.mrf.mxu1 }
 0x1cc   :  { %v2077_v1 = vpop.f32.mrf.mxu0 }
 0x1cd   :  { %v2329_v1 = vlaneseq }
 0x1cf   :  { %v2101_v4 = vpop.f32.mrf.mxu2  ;;  %v2114_v5 = vpop.f32.mrf.mxu3  ;;  %vm2331_vm2 = vcmp.lt.s32.totalorder %v2329_v1, 896 }
 0x1d0   :  { %v2102_v7 = vadd.f32 %v2101_v4, %v2089_v6 }
 0x1d2   :  { %v2115_v9 = vadd.f32 %v2114_v5, %v2102_v7 }
 0x1d4   :  { %v3387_v11 = vmul.f32 -1.442695, %v2115_v9 }
 0x1d6   :  { %3674 = vpow2.f32 %v3387_v11 }
 0x1d7   :  { %v2103_v10 = vpop.f32.mrf.mxu2  ;;  %v2116_v12 = vpop.f32.mrf.mxu3  ;;  %3676 = vpow2.f32 %v3386_v14 }
 0x1dc   :  { %v3675_v15 = vpop.eup %3674 }
 0x1dd   :  { %v3677_v19 = vpop.eup %3676  ;;  %v2196_v20 = vadd.f32 1.0, %v3675_v15 }
 0x1de   :  { %v2195_v22 = vadd.f32 1.0, %v3677_v19 }
 0x1df   :  { %3678 = vrcp.f32 %v2196_v20  ;;  %v2284_v23 = vand.u32 2147483648, %v2196_v20  ;;  %vm2278_vm5 = vweird.f32 %v2196_v20  ;;  %v2282_v46 = vand.u32 2147483647, %v2196_v20 }
 0x1e0   :  { %3680 = vrcp.f32 %v2195_v22  ;;  %v2269_v44 = vand.u32 2147483648, %v2195_v22  ;;  %vm2263_vm7 = vweird.f32 %v2195_v22  ;;  %v2267_v48 = vand.u32 2147483647, %v2195_v22 }
 0x1e1   :  { %v2285_v50 = vor.u32 1.1754944e-38, %v2284_v23  ;;  %vm2283_vm9 = vcmp.eq.f32.partialorder %v2282_v46, 8.507059e+37 }
 0x1e2   :  { %v2270_v52 = vor.u32 1.1754944e-38, %v2269_v44  ;;  %vm2268_vm11 = vcmp.eq.f32.partialorder %v2267_v48, 8.507059e+37 }
 0x1e3   :  { %v2127_v16 = vpop.f32.mrf.mxu0  ;;  %v2140_v17 = vpop.f32.mrf.mxu1 }
 0x1e4   :  { %v2128_v21 = vadd.f32 %v2127_v16, %v1798_v18 }
 0x1e5   :  { %v3679_v32 = vpop.eup %3678 }
 0x1e6   :  { %v2141_v27 = vadd.f32 %v2140_v17, %v2128_v21  ;;  %v3681_v34 = vpop.eup %3680  ;;  %v2274_v60 = vmul.f32 %v3679_v32, %v2196_v20  ;;  %vm2279_vm3 = vweird.f32 %v3679_v32 }
 0x1e7   :  { %v2259_v35 = vmul.f32 %v3681_v34, %v2195_v22  ;;  %vm2264_vm4 = vweird.f32 %v3681_v34  ;;  %vm2280_vm6 = vmor %vm2278_vm5, %vm2279_vm3 }
 0x1e8   :  { %v2275_v36 = vsub.f32 1.0, %v2274_v60  ;;  %vm2265_vm8 = vmor %vm2263_vm7, %vm2264_vm4 }
 0x1e9   :  { %v2260_v39 = vsub.f32 1.0, %v2259_v35 }
 0x1ea   :  { %v2276_v41 = vmul.f32 %v3679_v32, %v2275_v36 }
 0x1eb   :  { %v2129_v25 = vpop.f32.mrf.mxu0  ;;  %v2142_v26 = vpop.f32.mrf.mxu1  ;;  %v2261_v42 = vmul.f32 %v3681_v34, %v2260_v39 }
 0x1ec   :  { %v2277_v43 = vadd.f32 %v3679_v32, %v2276_v41 }
 0x1ed   :  { %v2262_v24 = vadd.f32 %v3681_v34, %v2261_v42 }
 0x1ee   :  { %v2281_v49 = vsel %vm2280_vm6, %v3679_v32, %v2277_v43 }
 0x1ef   :  { %v2153_v28 = vpop.f32.mrf.mxu2  ;;  %v2166_v29 = vpop.f32.mrf.mxu3  ;;  %v2266_v54 = vsel %vm2265_vm8, %v3681_v34, %v2262_v24  ;;  %v2286_v56 = vsel %vm2283_vm9, %v2285_v50, %v2281_v49 }
 0x1f0   :  { %v2154_v30 = vadd.f32 %v2153_v28, %v2141_v27  ;;  %v2271_v59 = vsel %vm2268_vm11, %v2270_v52, %v2266_v54  ;;  %v2314_v0 = vrot.slane %v2286_v56, 3 }
 0x1f1   :  { %v2313_v4 = vrot.slane %v2271_v59, 4 }
 0x1f2   :  { %v2167_v31 = vadd.f32 %v2166_v29, %v2154_v30 }
 0x1f3   :  { %v2323_v6 = vsel %vm2322_vm15, %v2313_v4, %v2314_v0 }
 0x1f4   :  { %v3388_v33 = vmul.f32 -1.442695, %v2167_v31 }
 0x1f6   :  { %3682 = vpow2.f32 %v3388_v33 }
 0x1f7   :  { %v2155_v38 = vpop.f32.mrf.mxu2  ;;  %v2168_v61 = vpop.f32.mrf.mxu3 }
 0x1fc   :  { %v3683_v37 = vpop.eup %3682 }
 0x1fd   :  { %v2197_v40 = vadd.f32 1.0, %v3683_v37 }
 0x1ff   :  { %3684 = vrcp.f32 %v2197_v40  ;;  %v2299_v53 = vand.u32 2147483648, %v2197_v40  ;;  %v2297_v58 = vand.u32 2147483647, %v2197_v40  ;;  %vm2293_vm12 = vweird.f32 %v2197_v40 }
 0x201   :  { %v2300_v63 = vor.u32 1.1754944e-38, %v2299_v53  ;;  %vm2298_vm14 = vcmp.eq.f32.partialorder %v2297_v58, 8.507059e+37 }
 0x205   :  { %v3685_v45 = vpop.eup %3684 }
 0x206   :  { %v2289_v47 = vmul.f32 %v3685_v45, %v2197_v40  ;;  %vm2294_vm10 = vweird.f32 %v3685_v45 }
 0x207   :  { %vm2295_vm13 = vmor %vm2293_vm12, %vm2294_vm10 }
 0x208   :  { %v2290_v51 = vsub.f32 1.0, %v2289_v47 }
 0x20a   :  { %v2291_v55 = vmul.f32 %v3685_v45, %v2290_v51 }
 0x20c   :  { %v2292_v62 = vadd.f32 %v3685_v45, %v2291_v55 }
 0x20e   :  { %v2296_v2 = vsel %vm2295_vm13, %v3685_v45, %v2292_v62 }
 0x20f   :  { %v2301_v3 = vsel %vm2298_vm14, %v2300_v63, %v2296_v2 }
 0x210   :  { %v2315_v5 = vrot.slane %v2301_v3, 2 }
 0x212   :  { %v2325_v7 = vsel %vm2324_vm0, %v2323_v6, %v2315_v5 }
 0x213   :  { %v2327_v8 = vsel %vm2326_vm1, %v3972_v57, %v2325_v7 }
 0x214   :  { %2333 = vst.msk [vmem:[#allocation13] sm:$0x7f] %vm2331_vm2, %v2327_v8 }
 0x215   :  { %2344 = dma.vmem_to_hbm [thread:$0]  %s2340_s14, 112, %s2342_s16, [#allocation6]  }
 0x216   :  { %3836 = dma.done.wait [#allocation6], 112  }
 0x217   :  { %3837 = vsyncadd [#allocation6], 4294967184 }
 0x218   :  { %2349 = vsyncpa [#allocation5], 1 }
 0x219   :  { %2350 = vsyncpa [#allocation8], 1 }
 0x21a   :  { %2351 = vsyncpa [#allocation11], 1 }
 0x21b   :  { %2352 = vsyncpa [#allocation6], 1 }

</bundles_post_ra>
